<compile_context>
chip_gen: v7x
topology: tpu7x:2x2x1
jax: 0.10.0
libtpu: 0.0.40
codegen_flags: <defaults>
</compile_context>

<pallas_src>
import functools
import math

import jax
import jax.numpy as jnp
from jax.experimental import pallas as pl
from jax.experimental.pallas import tpu as pltpu


MATMUL_DTYPE = jnp.bfloat16   # MXU input dtype; accumulation stays f32.


def _pick_tile(dim, *candidates):
    """Largest candidate tile that divides dim; falls back to the full dim."""
    for c in candidates:
        if dim >= c and dim % c == 0:
            return c
    return dim


# ----------------------------- tiled dense (+bias, +gelu) -----------------------------

def _dense_kernel(x_ref, w_ref, b_ref, o_ref, acc_ref, *, activation):
    @pl.when(pl.program_id(2) == 0)
    def _():
        acc_ref[...] = jnp.zeros_like(acc_ref)

    acc_ref[...] += jnp.dot(
        x_ref[...].astype(MATMUL_DTYPE),
        w_ref[...].astype(MATMUL_DTYPE),
        preferred_element_type=jnp.float32)

    @pl.when(pl.program_id(2) == pl.num_programs(2) - 1)
    def _():
        y = acc_ref[...] + b_ref[...]            # bias add in f32
        if activation == "gelu":
            y = jax.nn.gelu(y, approximate=True)  # == ALBERT gelu_new
        o_ref[...] = y.astype(o_ref.dtype)


def pallas_dense(x, w, b, activation=None):
    """y = act(x @ w + b).  x:[M,K] w:[K,N] b:[N].  K is the reduction grid axis."""
    M, K = x.shape
    N = w.shape[1]
    tm = _pick_tile(M, 256, 128)
    tn = _pick_tile(N, 256, 128)
    tk = _pick_tile(K, 512, 256, 128)
    grid = (M // tm, N // tn, K // tk)
    return pl.pallas_call(
        functools.partial(_dense_kernel, activation=activation),
        out_shape=jax.ShapeDtypeStruct((M, N), x.dtype),
        grid=grid,
        in_specs=[
            pl.BlockSpec((tm, tk), lambda i, j, k: (i, k)),
            pl.BlockSpec((tk, tn), lambda i, j, k: (k, j)),
            pl.BlockSpec((1, tn), lambda i, j, k: (0, j)),
        ],
        out_specs=pl.BlockSpec((tm, tn), lambda i, j, k: (i, j)),
        scratch_shapes=[pltpu.VMEM((tm, tn), jnp.float32)],
        compiler_params=pltpu.CompilerParams(
            dimension_semantics=("parallel", "parallel", "arbitrary")),
    )(x, w, b.reshape(1, N))


# ----------------------------- LayerNorm (optionally fused residual add) -----------------------------

def _layernorm_kernel(x_ref, g_ref, b_ref, o_ref, *, eps):
    x = x_ref[...].astype(jnp.float32)
    mu = jnp.mean(x, axis=-1, keepdims=True)
    var = jnp.mean((x - mu) ** 2, axis=-1, keepdims=True)
    y = (x - mu) * jax.lax.rsqrt(var + eps)
    o_ref[...] = (y * g_ref[...] + b_ref[...]).astype(o_ref.dtype)


def _add_layernorm_kernel(x_ref, r_ref, g_ref, b_ref, o_ref, *, eps):
    x = x_ref[...].astype(jnp.float32) + r_ref[...].astype(jnp.float32)
    mu = jnp.mean(x, axis=-1, keepdims=True)
    var = jnp.mean((x - mu) ** 2, axis=-1, keepdims=True)
    y = (x - mu) * jax.lax.rsqrt(var + eps)
    o_ref[...] = (y * g_ref[...] + b_ref[...]).astype(o_ref.dtype)


def pallas_layernorm(x, gamma, beta, eps=1e-12):
    M, D = x.shape
    tm = _pick_tile(M, 256, 128)
    row = pl.BlockSpec((tm, D), lambda i: (i, 0))
    vec = pl.BlockSpec((1, D), lambda i: (0, 0))
    return pl.pallas_call(
        functools.partial(_layernorm_kernel, eps=eps),
        out_shape=jax.ShapeDtypeStruct((M, D), x.dtype),
        grid=(M // tm,),
        in_specs=[row, vec, vec],
        out_specs=row,
        compiler_params=pltpu.CompilerParams(dimension_semantics=("parallel",)),
    )(x, gamma.reshape(1, D), beta.reshape(1, D))


def pallas_add_layernorm(x, res, gamma, beta, eps=1e-12):
    """LayerNorm(x + res) fused in one kernel (saves an HBM round-trip)."""
    M, D = x.shape
    tm = _pick_tile(M, 256, 128)
    row = pl.BlockSpec((tm, D), lambda i: (i, 0))
    vec = pl.BlockSpec((1, D), lambda i: (0, 0))
    return pl.pallas_call(
        functools.partial(_add_layernorm_kernel, eps=eps),
        out_shape=jax.ShapeDtypeStruct((M, D), x.dtype),
        grid=(M // tm,),
        in_specs=[row, row, vec, vec],
        out_specs=row,
        compiler_params=pltpu.CompilerParams(dimension_semantics=("parallel",)),
    )(x, res, gamma.reshape(1, D), beta.reshape(1, D))


# ----------------------------- flash-style attention -----------------------------

def _flash_attn_kernel(mask_ref, q_ref, k_ref, v_ref, o_ref,
                       m_sc, l_sc, acc_sc, *, scale):
    kv = pl.program_id(3)

    @pl.when(kv == 0)
    def _():
        m_sc[...] = jnp.full(m_sc.shape, -jnp.inf, jnp.float32)
        l_sc[...] = jnp.zeros_like(l_sc)
        acc_sc[...] = jnp.zeros_like(acc_sc)

    q = q_ref[...].astype(MATMUL_DTYPE)      # (tq, dh)
    k = k_ref[...].astype(MATMUL_DTYPE)      # (tkv, dh)
    v = v_ref[...].astype(MATMUL_DTYPE)      # (tkv, dh)
    bias = mask_ref[...]                      # (1, tkv) additive mask (f32)

    s = jax.lax.dot_general(q, k, (((1,), (1,)), ((), ())),
                            preferred_element_type=jnp.float32) * scale
    s = s + bias                              # broadcast over query rows

    m_new = jnp.maximum(m_sc[...], jnp.max(s, axis=-1, keepdims=True))
    alpha = jnp.exp(m_sc[...] - m_new)
    p = jnp.exp(s - m_new)
    l_sc[...] = alpha * l_sc[...] + jnp.sum(p, axis=-1, keepdims=True)
    acc_sc[...] = alpha * acc_sc[...] + jnp.dot(
        p.astype(MATMUL_DTYPE), v, preferred_element_type=jnp.float32)
    m_sc[...] = m_new

    @pl.when(kv == pl.num_programs(3) - 1)
    def _():
        o_ref[...] = (acc_sc[...] *
                      pl.reciprocal(l_sc[...], approx=True)).astype(o_ref.dtype)


def pallas_flash_attention(q, k, v, mask, scale):
    """q,k,v: [B,H,S,dh]; mask: [B,1,S] additive -> context [B,H,S,dh]."""
    B, H, S, dh = q.shape
    tq = _pick_tile(S, 256, 128)
    tkv = _pick_tile(S, 256, 128)
    grid = (B, H, S // tq, S // tkv)
    q_spec = pl.BlockSpec((None, None, tq, dh), lambda b, h, qi, ki: (b, h, qi, 0))
    kv_spec = pl.BlockSpec((None, None, tkv, dh), lambda b, h, qi, ki: (b, h, ki, 0))
    return pl.pallas_call(
        functools.partial(_flash_attn_kernel, scale=scale),
        out_shape=jax.ShapeDtypeStruct((B, H, S, dh), q.dtype),
        grid=grid,
        in_specs=[
            pl.BlockSpec((None, 1, tkv), lambda b, h, qi, ki: (b, 0, ki)),
            q_spec, kv_spec, kv_spec,
        ],
        out_specs=pl.BlockSpec((None, None, tq, dh),
                               lambda b, h, qi, ki: (b, h, qi, 0)),
        scratch_shapes=[
            pltpu.VMEM((tq, 1), jnp.float32),   # running max
            pltpu.VMEM((tq, 1), jnp.float32),   # running denom
            pltpu.VMEM((tq, dh), jnp.float32),  # running numerator
        ],
        compiler_params=pltpu.CompilerParams(
            dimension_semantics=("parallel", "parallel", "parallel", "arbitrary")),
    )(mask, q, k, v)


# ----------------------------- merge_emb (both picked layers in one kernel) -----------------------------

def _merge_pair_kernel(m_ref, h_ref, o_ref):
    o_ref[...] = jnp.dot(
        m_ref[...].astype(MATMUL_DTYPE), h_ref[...].astype(MATMUL_DTYPE),
        preferred_element_type=jnp.float32).astype(o_ref.dtype)


def pallas_merge_emb_pair(token_head_mask, hidden_pair):
    """word_repr[l,b] = token_head_mask[b] @ hidden_pair[l,b].

    token_head_mask: [B,W,S]; hidden_pair: [L,B,S,D] -> [L,B,W,D]."""
    L, B, S, D = hidden_pair.shape
    W = token_head_mask.shape[1]
    return pl.pallas_call(
        _merge_pair_kernel,
        out_shape=jax.ShapeDtypeStruct((L, B, W, D), hidden_pair.dtype),
        grid=(L, B),
        in_specs=[
            pl.BlockSpec((None, W, S), lambda l, b: (b, 0, 0)),
            pl.BlockSpec((None, None, S, D), lambda l, b: (l, b, 0, 0)),
        ],
        out_specs=pl.BlockSpec((None, None, W, D), lambda l, b: (l, b, 0, 0)),
        compiler_params=pltpu.CompilerParams(
            dimension_semantics=("parallel", "parallel")),
    )(token_head_mask, hidden_pair)


# ----------------------------- ALBERT model glue -----------------------------

def albert_embeddings(ep, token_type_ids, input_ids=None, inputs_embeds=None,
                      eps=1e-12):
    B, S = token_type_ids.shape
    if inputs_embeds is None:
        # TODO(synk): embedding-table gather left to XLA (jnp.take); a Pallas DMA
        # gather only pays off at much larger vocab/seq sizes.
        inputs_embeds = jnp.take(ep["word"], input_ids, axis=0)
    pos = jnp.take(ep["pos"], jnp.arange(S), axis=0)[None, :, :]
    typ = jnp.take(ep["type"], token_type_ids, axis=0)
    emb = inputs_embeds + pos + typ
    E = emb.shape[-1]
    out = pallas_layernorm(emb.reshape(B * S, E), ep["ln_g"], ep["ln_b"], eps)
    # dropout: eval mode -> identity
    return out.reshape(B, S, E)


def albert_layer(lp, x, mask_b1s, cfg):
    B, S, H = x.shape
    nh, dh = cfg["heads"], cfg["head_dim"]
    x2 = x.reshape(B * S, H)

    # Fused Q/K/V projection: one [H, 3H] dense (x read from HBM once).
    qkv = pallas_dense(x2, lp["qkv_w"], lp["qkv_b"])              # [B*S, 3H]
    # TODO(synk): head-split reshape/transpose handled by XLA; a layout-aware
    # attention BlockSpec over [B,S,H] would need a 128-multiple head_dim.
    qkv = qkv.reshape(B, S, 3, nh, dh).transpose(2, 0, 3, 1, 4)    # [3,B,nh,S,dh]
    q, k, v = qkv[0], qkv[1], qkv[2]

    ctx = pallas_flash_attention(q, k, v, mask_b1s, 1.0 / math.sqrt(dh))
    ctx = ctx.transpose(0, 2, 1, 3).reshape(B * S, H)

    attn_out = pallas_dense(ctx, lp["o_w"], lp["o_b"])
    attn_out = pallas_add_layernorm(attn_out, x2,
                                    lp["attn_ln_g"], lp["attn_ln_b"], cfg["eps"])

    ffn = pallas_dense(attn_out, lp["ffn_w"], lp["ffn_b"], activation="gelu")
    ffn_out = pallas_dense(ffn, lp["ffn_o_w"], lp["ffn_o_b"])
    out = pallas_add_layernorm(ffn_out, attn_out,
                               lp["ffn_ln_g"], lp["ffn_ln_b"], cfg["eps"])
    return out.reshape(B, S, H)


def bert_representation_forward(params, hyps, cfg, tokens, token_mask,
                                segments, token_head_mask):
    token_type_ids = segments[0]
    B, S = tokens.shape
    H = cfg["hidden"]

    # self.bert.embeddings(tokens, segments[0]) + dropout (eval -> identity)
    embedding_output = albert_embeddings(params["emb"], token_type_ids,
                                         input_ids=tokens, eps=cfg["eps"])
    # The reference then calls AlbertModel(..., inputs_embeds=embedding_output),
    # which re-applies the embedding layer (adds position/type embeddings again
    # and re-LayerNorms).  Reproduced faithfully here.
    emb2 = albert_embeddings(params["emb"], token_type_ids,
                             inputs_embeds=embedding_output, eps=cfg["eps"])

    # AlbertTransformer: embedding_hidden_mapping_in, then shared layers.
    x = pallas_dense(emb2.reshape(B * S, -1),
                     params["map_w"], params["map_b"]).reshape(B, S, H)
    hidden_states = [x]

    # Additive attention mask kept as [B,1,S]; broadcast inside the kernel.
    mask_b1s = ((1.0 - token_mask.astype(jnp.float32)) * -10000.0)[:, None, :]

    for _ in range(cfg["num_layers"]):
        x = albert_layer(params["layer"], x, mask_b1s, cfg)   # shared ALBERT params
        hidden_states.append(x)

    nlay = hyps["bert_layers"]
    # Both picked layers merged in a single kernel invocation (grid over (layer, batch)).
    hidden_pair = jnp.stack(
        [hidden_states[-nlay], hidden_states[-nlay + 1]], axis=0)
    merged = pallas_merge_emb_pair(token_head_mask, hidden_pair)
    trigger_hidden, entity_hidden = merged[0], merged[1]
    sequence_output = hidden_states[1][:, 0]                 # CLS of layer-1 output
    return trigger_hidden, entity_hidden, sequence_output


# ----------------------------- parameter init -----------------------------

def init_params(key, cfg):
    def normal(k, shape):
        return 0.02 * jax.random.normal(k, shape, dtype=jnp.float32)

    ks = jax.random.split(key, 12)
    E, H, I = cfg["emb_size"], cfg["hidden"], cfg["intermediate"]
    emb = {
        "word": normal(ks[0], (cfg["vocab"], E)),
        "pos": normal(ks[1], (cfg["max_pos"], E)),
        "type": normal(ks[2], (cfg["type_vocab"], E)),
        "ln_g": jnp.ones((E,), jnp.float32),
        "ln_b": jnp.zeros((E,), jnp.float32),
    }
    layer = {
        # Fused QKV projection weights: [H, 3H] (q | k | v).
        "qkv_w": normal(ks[3], (H, 3 * H)),
        "qkv_b": jnp.zeros((3 * H,), jnp.float32),
        "o_w": normal(ks[6], (H, H)), "o_b": jnp.zeros((H,), jnp.float32),
        "attn_ln_g": jnp.ones((H,), jnp.float32),
        "attn_ln_b": jnp.zeros((H,), jnp.float32),
        "ffn_w": normal(ks[7], (H, I)), "ffn_b": jnp.zeros((I,), jnp.float32),
        "ffn_o_w": normal(ks[8], (I, H)), "ffn_o_b": jnp.zeros((H,), jnp.float32),
        "ffn_ln_g": jnp.ones((H,), jnp.float32),
        "ffn_ln_b": jnp.zeros((H,), jnp.float32),
    }
    return {
        "emb": emb,
        "map_w": normal(ks[9], (E, H)),
        "map_b": jnp.zeros((H,), jnp.float32),
        "layer": layer,   # ALBERT: one parameter set shared across all layers
    }


# ----------------------------------- main -----------------------------------

if __name__ == "__main__":
    # Toy config kept small but lane-dense (hidden / intermediate multiples of 128)
    # so output stores are unmasked vst; correctness-scale only.
    CFG = dict(vocab=32, type_vocab=2, max_pos=16, emb_size=64, hidden=128,
               heads=2, head_dim=64, intermediate=512, num_layers=3, eps=1e-12)
    HYPS = dict(bert_layers=2, bert_dropout=0.1)

    B, S, W = 2, 8, 4
    key = jax.random.PRNGKey(0)
    kp, kt = jax.random.split(key)

    params = init_params(kp, CFG)

    tokens = jax.random.randint(kt, (B, S), 0, CFG["vocab"], dtype=jnp.int32)
    token_mask = jnp.ones((B, S), jnp.float32).at[1, -2:].set(0.0)
    segments = jnp.zeros((1, B, S), jnp.int32)           # forward uses segments[0]
    # token_head_mask: each word averages two consecutive subword tokens.
    token_head_mask = jnp.zeros((B, W, S), jnp.float32)
    for w in range(W):
        token_head_mask = token_head_mask.at[:, w, 2 * w].set(0.5)
        token_head_mask = token_head_mask.at[:, w, 2 * w + 1].set(0.5)

    fwd = jax.jit(lambda p, t, m, s, thm:
                  bert_representation_forward(p, HYPS, CFG, t, m, s, thm))

    trigger_hidden, entity_hidden, sequence_output = fwd(
        params, tokens, token_mask, segments, token_head_mask)
    jax.block_until_ready((trigger_hidden, entity_hidden, sequence_output))

    assert trigger_hidden.shape == (B, W, CFG["hidden"])
    assert entity_hidden.shape == (B, W, CFG["hidden"])
    assert sequence_output.shape == (B, CFG["hidden"])
    assert bool(jnp.all(jnp.isfinite(trigger_hidden)))
    assert bool(jnp.all(jnp.isfinite(entity_hidden)))
    assert bool(jnp.all(jnp.isfinite(sequence_output)))
    print("KERNEL_OK")
</pallas_src>

<mosaic_0001>
module attributes {stable_mosaic.version = 11 : i64} {
  func.func @_dense_kernel(%arg0: i32, %arg1: i32, %arg2: i32, %arg3: memref<16x64xf32, #tpu.memory_space<vmem>>, %arg4: memref<64x128xf32, #tpu.memory_space<vmem>>, %arg5: memref<1x128xf32, #tpu.memory_space<vmem>>, %arg6: memref<16x128xf32, #tpu.memory_space<vmem>>, %arg7: memref<16x128xf32, #tpu.memory_space<vmem>>) attributes {dimension_semantics = [#tpu.dimension_semantics<parallel>, #tpu.dimension_semantics<parallel>, #tpu.dimension_semantics<arbitrary>], iteration_bounds = array<i64: 1, 1, 1>, scalar_prefetch = 0 : i64, scratch_operands = 1 : i64, tpu.core_type = #tpu.core_type<tc>, window_params = [{transform_indices = @transform_0, window_bounds = array<i64: 16, 64>}, {transform_indices = @transform_1, window_bounds = array<i64: 64, 128>}, {transform_indices = @transform_2, window_bounds = array<i64: 1, 128>}, {transform_indices = @transform_3, window_bounds = array<i64: 16, 128>}]} {
    %c0_i32 = arith.constant 0 : i32
    %0 = arith.cmpi eq, %arg2, %c0_i32 : i32
    %1 = arith.extui %0 : i1 to i32
    %c0_i32_0 = arith.constant 0 : i32
    %2 = arith.cmpi ne, %1, %c0_i32_0 : i32
    scf.if %2 {
      %cst_10 = arith.constant 0.000000e+00 : f32
      %14 = vector.broadcast %cst_10 : f32 to vector<16x128xf32>
      %c0_11 = arith.constant 0 : index
      %c0_12 = arith.constant 0 : index
      %15 = vector.load %arg7[%c0_11, %c0_12] : memref<16x128xf32, #tpu.memory_space<vmem>>, vector<16x128xf32>
      tpu.vector_store %arg7[%c0_11, %c0_12], %14 {strides = array<i32>} : memref<16x128xf32, #tpu.memory_space<vmem>>, vector<16x128xf32>,
    } else {
    }
    %c0 = arith.constant 0 : index
    %c0_1 = arith.constant 0 : index
    %3 = vector.load %arg7[%c0, %c0_1] : memref<16x128xf32, #tpu.memory_space<vmem>>, vector<16x128xf32>
    %c0_2 = arith.constant 0 : index
    %c0_3 = arith.constant 0 : index
    %4 = vector.load %arg3[%c0_2, %c0_3] : memref<16x64xf32, #tpu.memory_space<vmem>>, vector<16x64xf32>
    %5 = arith.truncf %4 : vector<16x64xf32> to vector<16x64xbf16>
    %c0_4 = arith.constant 0 : index
    %c0_5 = arith.constant 0 : index
    %6 = vector.load %arg4[%c0_4, %c0_5] : memref<64x128xf32, #tpu.memory_space<vmem>>, vector<64x128xf32>
    %7 = arith.truncf %6 : vector<64x128xf32> to vector<64x128xbf16>
    %cst = arith.constant dense<0.000000e+00> : vector<16x128xf32>
    %8 = tpu.matmul %5, %7, %cst {dimension_numbers = #tpu.dot_dimension_numbers<[1], [0], [0], [1], [0, 0, 1, 1], [], []>} : vector<16x64xbf16>, vector<64x128xbf16>, vector<16x128xf32> -> vector<16x128xf32>
    %9 = arith.addf %3, %8 : vector<16x128xf32>
    %c0_6 = arith.constant 0 : index
    %c0_7 = arith.constant 0 : index
    %10 = vector.load %arg7[%c0_6, %c0_7] : memref<16x128xf32, #tpu.memory_space<vmem>>, vector<16x128xf32>
    tpu.vector_store %arg7[%c0_6, %c0_7], %9 {strides = array<i32>} : memref<16x128xf32, #tpu.memory_space<vmem>>, vector<16x128xf32>,
    %c0_i32_8 = arith.constant 0 : i32
    %11 = arith.cmpi eq, %arg2, %c0_i32_8 : i32
    %12 = arith.extui %11 : i1 to i32
    %c0_i32_9 = arith.constant 0 : i32
    %13 = arith.cmpi ne, %12, %c0_i32_9 : i32
    scf.if %13 {
      %c0_10 = arith.constant 0 : index
      %c0_11 = arith.constant 0 : index
      %14 = vector.load %arg7[%c0_10, %c0_11] : memref<16x128xf32, #tpu.memory_space<vmem>>, vector<16x128xf32>
      %c0_12 = arith.constant 0 : index
      %c0_13 = arith.constant 0 : index
      %15 = vector.load %arg5[%c0_12, %c0_13] : memref<1x128xf32, #tpu.memory_space<vmem>>, vector<1x128xf32>
      %16 = vector.broadcast %15 : vector<1x128xf32> to vector<16x128xf32>
      %17 = arith.addf %14, %16 : vector<16x128xf32>
      %c0_14 = arith.constant 0 : index
      %c0_15 = arith.constant 0 : index
      %18 = vector.load %arg6[%c0_14, %c0_15] : memref<16x128xf32, #tpu.memory_space<vmem>>, vector<16x128xf32>
      tpu.vector_store %arg6[%c0_14, %c0_15], %17 {strides = array<i32>} : memref<16x128xf32, #tpu.memory_space<vmem>>, vector<16x128xf32>,
    } else {
    }
    return
  }
  func.func @transform_0(%arg0: i32, %arg1: i32, %arg2: i32) -> (i32, i32) {
    %c0_i32 = arith.constant 0 : i32
    return %arg0, %arg2 : i32, i32
  }
  func.func @transform_1(%arg0: i32, %arg1: i32, %arg2: i32) -> (i32, i32) {
    %c0_i32 = arith.constant 0 : i32
    return %arg2, %arg1 : i32, i32
  }
  func.func @transform_2(%arg0: i32, %arg1: i32, %arg2: i32) -> (i32, i32) {
    %c0_i32 = arith.constant 0 : i32
    %c0_i32_0 = arith.constant 0 : i32
    return %c0_i32, %arg1 : i32, i32
  }
  func.func @transform_3(%arg0: i32, %arg1: i32, %arg2: i32) -> (i32, i32) {
    %c0_i32 = arith.constant 0 : i32
    return %arg0, %arg1 : i32, i32
  }
}

module attributes {stable_mosaic.version = 11 : i64} {
  func.func @_layernorm_kernel(%arg0: i32, %arg1: memref<16x64xf32, #tpu.memory_space<vmem>>, %arg2: memref<1x64xf32, #tpu.memory_space<vmem>>, %arg3: memref<1x64xf32, #tpu.memory_space<vmem>>, %arg4: memref<16x64xf32, #tpu.memory_space<vmem>>) attributes {dimension_semantics = [#tpu.dimension_semantics<parallel>], iteration_bounds = array<i64: 1>, scalar_prefetch = 0 : i64, scratch_operands = 0 : i64, tpu.core_type = #tpu.core_type<tc>, window_params = [{transform_indices = @transform_0, window_bounds = array<i64: 16, 64>}, {pipeline_mode = #tpu.pipeline_mode<synchronous>, transform_indices = @transform_1, window_bounds = array<i64: 1, 64>}, {pipeline_mode = #tpu.pipeline_mode<synchronous>, transform_indices = @transform_2, window_bounds = array<i64: 1, 64>}, {transform_indices = @transform_3, window_bounds = array<i64: 16, 64>}]} {
    %c0 = arith.constant 0 : index
    %c0_0 = arith.constant 0 : index
    %0 = vector.load %arg1[%c0, %c0_0] : memref<16x64xf32, #tpu.memory_space<vmem>>, vector<16x64xf32>
    %cst = arith.constant dense<0.000000e+00> : vector<16xf32>
    %1 = vector.multi_reduction <add>, %0, %cst [1] : vector<16x64xf32> to vector<16xf32>
    %2 = vector.shape_cast %1 : vector<16xf32> to vector<16x1xf32>
    %cst_1 = arith.constant 6.400000e+01 : f32
    %3 = vector.broadcast %cst_1 : f32 to vector<16x1xf32>
    %4 = arith.divf %2, %3 : vector<16x1xf32>
    %5 = vector.broadcast %4 : vector<16x1xf32> to vector<16x64xf32>
    %6 = arith.subf %0, %5 : vector<16x64xf32>
    %7 = arith.mulf %6, %6 : vector<16x64xf32>
    %cst_2 = arith.constant dense<0.000000e+00> : vector<16xf32>
    %8 = vector.multi_reduction <add>, %7, %cst_2 [1] : vector<16x64xf32> to vector<16xf32>
    %9 = vector.shape_cast %8 : vector<16xf32> to vector<16x1xf32>
    %cst_3 = arith.constant 6.400000e+01 : f32
    %10 = vector.broadcast %cst_3 : f32 to vector<16x1xf32>
    %11 = arith.divf %9, %10 : vector<16x1xf32>
    %12 = vector.broadcast %4 : vector<16x1xf32> to vector<16x64xf32>
    %13 = arith.subf %0, %12 : vector<16x64xf32>
    %cst_4 = arith.constant 9.99999996E-13 : f32
    %14 = vector.broadcast %cst_4 : f32 to vector<16x1xf32>
    %15 = arith.addf %11, %14 : vector<16x1xf32>
    %16 = math.rsqrt %15 : vector<16x1xf32>
    %17 = vector.broadcast %16 : vector<16x1xf32> to vector<16x64xf32>
    %18 = arith.mulf %13, %17 : vector<16x64xf32>
    %c0_5 = arith.constant 0 : index
    %c0_6 = arith.constant 0 : index
    %19 = vector.load %arg2[%c0_5, %c0_6] : memref<1x64xf32, #tpu.memory_space<vmem>>, vector<1x64xf32>
    %20 = vector.broadcast %19 : vector<1x64xf32> to vector<16x64xf32>
    %21 = arith.mulf %18, %20 : vector<16x64xf32>
    %c0_7 = arith.constant 0 : index
    %c0_8 = arith.constant 0 : index
    %22 = vector.load %arg3[%c0_7, %c0_8] : memref<1x64xf32, #tpu.memory_space<vmem>>, vector<1x64xf32>
    %23 = vector.broadcast %22 : vector<1x64xf32> to vector<16x64xf32>
    %24 = arith.addf %21, %23 : vector<16x64xf32>
    %c0_9 = arith.constant 0 : index
    %c0_10 = arith.constant 0 : index
    %25 = vector.load %arg4[%c0_9, %c0_10] : memref<16x64xf32, #tpu.memory_space<vmem>>, vector<16x64xf32>
    tpu.vector_store %arg4[%c0_9, %c0_10], %24 {strides = array<i32>} : memref<16x64xf32, #tpu.memory_space<vmem>>, vector<16x64xf32>,
    return
  }
  func.func @transform_0(%arg0: i32) -> (i32, i32) {
    %c0_i32 = arith.constant 0 : i32
    %c0_i32_0 = arith.constant 0 : i32
    return %arg0, %c0_i32 : i32, i32
  }
  func.func @transform_1(%arg0: i32) -> (i32, i32) {
    %c0_i32 = arith.constant 0 : i32
    %c0_i32_0 = arith.constant 0 : i32
    %c0_i32_1 = arith.constant 0 : i32
    return %c0_i32, %c0_i32_0 : i32, i32
  }
  func.func @transform_2(%arg0: i32) -> (i32, i32) {
    %c0_i32 = arith.constant 0 : i32
    %c0_i32_0 = arith.constant 0 : i32
    %c0_i32_1 = arith.constant 0 : i32
    return %c0_i32, %c0_i32_0 : i32, i32
  }
  func.func @transform_3(%arg0: i32) -> (i32, i32) {
    %c0_i32 = arith.constant 0 : i32
    %c0_i32_0 = arith.constant 0 : i32
    return %arg0, %c0_i32 : i32, i32
  }
}

module attributes {stable_mosaic.version = 11 : i64} {
  func.func @_dense_kernel(%arg0: i32, %arg1: i32, %arg2: i32, %arg3: memref<16x128xf32, #tpu.memory_space<vmem>>, %arg4: memref<128x128xf32, #tpu.memory_space<vmem>>, %arg5: memref<1x128xf32, #tpu.memory_space<vmem>>, %arg6: memref<16x128xf32, #tpu.memory_space<vmem>>, %arg7: memref<16x128xf32, #tpu.memory_space<vmem>>) attributes {dimension_semantics = [#tpu.dimension_semantics<parallel>, #tpu.dimension_semantics<parallel>, #tpu.dimension_semantics<arbitrary>], iteration_bounds = array<i64: 1, 3, 1>, scalar_prefetch = 0 : i64, scratch_operands = 1 : i64, tpu.core_type = #tpu.core_type<tc>, window_params = [{transform_indices = @transform_0, window_bounds = array<i64: 16, 128>}, {transform_indices = @transform_1, window_bounds = array<i64: 128, 128>}, {transform_indices = @transform_2, window_bounds = array<i64: 1, 128>}, {transform_indices = @transform_3, window_bounds = array<i64: 16, 128>}]} {
    %c0_i32 = arith.constant 0 : i32
    %0 = arith.cmpi eq, %arg2, %c0_i32 : i32
    %1 = arith.extui %0 : i1 to i32
    %c0_i32_0 = arith.constant 0 : i32
    %2 = arith.cmpi ne, %1, %c0_i32_0 : i32
    scf.if %2 {
      %cst_10 = arith.constant 0.000000e+00 : f32
      %14 = vector.broadcast %cst_10 : f32 to vector<16x128xf32>
      %c0_11 = arith.constant 0 : index
      %c0_12 = arith.constant 0 : index
      %15 = vector.load %arg7[%c0_11, %c0_12] : memref<16x128xf32, #tpu.memory_space<vmem>>, vector<16x128xf32>
      tpu.vector_store %arg7[%c0_11, %c0_12], %14 {strides = array<i32>} : memref<16x128xf32, #tpu.memory_space<vmem>>, vector<16x128xf32>,
    } else {
    }
    %c0 = arith.constant 0 : index
    %c0_1 = arith.constant 0 : index
    %3 = vector.load %arg7[%c0, %c0_1] : memref<16x128xf32, #tpu.memory_space<vmem>>, vector<16x128xf32>
    %c0_2 = arith.constant 0 : index
    %c0_3 = arith.constant 0 : index
    %4 = vector.load %arg3[%c0_2, %c0_3] : memref<16x128xf32, #tpu.memory_space<vmem>>, vector<16x128xf32>
    %5 = arith.truncf %4 : vector<16x128xf32> to vector<16x128xbf16>
    %c0_4 = arith.constant 0 : index
    %c0_5 = arith.constant 0 : index
    %6 = vector.load %arg4[%c0_4, %c0_5] : memref<128x128xf32, #tpu.memory_space<vmem>>, vector<128x128xf32>
    %7 = arith.truncf %6 : vector<128x128xf32> to vector<128x128xbf16>
    %cst = arith.constant dense<0.000000e+00> : vector<16x128xf32>
    %8 = tpu.matmul %5, %7, %cst {dimension_numbers = #tpu.dot_dimension_numbers<[1], [0], [0], [1], [0, 0, 1, 1], [], []>} : vector<16x128xbf16>, vector<128x128xbf16>, vector<16x128xf32> -> vector<16x128xf32>
    %9 = arith.addf %3, %8 : vector<16x128xf32>
    %c0_6 = arith.constant 0 : index
    %c0_7 = arith.constant 0 : index
    %10 = vector.load %arg7[%c0_6, %c0_7] : memref<16x128xf32, #tpu.memory_space<vmem>>, vector<16x128xf32>
    tpu.vector_store %arg7[%c0_6, %c0_7], %9 {strides = array<i32>} : memref<16x128xf32, #tpu.memory_space<vmem>>, vector<16x128xf32>,
    %c0_i32_8 = arith.constant 0 : i32
    %11 = arith.cmpi eq, %arg2, %c0_i32_8 : i32
    %12 = arith.extui %11 : i1 to i32
    %c0_i32_9 = arith.constant 0 : i32
    %13 = arith.cmpi ne, %12, %c0_i32_9 : i32
    scf.if %13 {
      %c0_10 = arith.constant 0 : index
      %c0_11 = arith.constant 0 : index
      %14 = vector.load %arg7[%c0_10, %c0_11] : memref<16x128xf32, #tpu.memory_space<vmem>>, vector<16x128xf32>
      %c0_12 = arith.constant 0 : index
      %c0_13 = arith.constant 0 : index
      %15 = vector.load %arg5[%c0_12, %c0_13] : memref<1x128xf32, #tpu.memory_space<vmem>>, vector<1x128xf32>
      %16 = vector.broadcast %15 : vector<1x128xf32> to vector<16x128xf32>
      %17 = arith.addf %14, %16 : vector<16x128xf32>
      %c0_14 = arith.constant 0 : index
      %c0_15 = arith.constant 0 : index
      %18 = vector.load %arg6[%c0_14, %c0_15] : memref<16x128xf32, #tpu.memory_space<vmem>>, vector<16x128xf32>
      tpu.vector_store %arg6[%c0_14, %c0_15], %17 {strides = array<i32>} : memref<16x128xf32, #tpu.memory_space<vmem>>, vector<16x128xf32>,
    } else {
    }
    return
  }
  func.func @transform_0(%arg0: i32, %arg1: i32, %arg2: i32) -> (i32, i32) {
    %c0_i32 = arith.constant 0 : i32
    return %arg0, %arg2 : i32, i32
  }
  func.func @transform_1(%arg0: i32, %arg1: i32, %arg2: i32) -> (i32, i32) {
    %c0_i32 = arith.constant 0 : i32
    return %arg2, %arg1 : i32, i32
  }
  func.func @transform_2(%arg0: i32, %arg1: i32, %arg2: i32) -> (i32, i32) {
    %c0_i32 = arith.constant 0 : i32
    %c0_i32_0 = arith.constant 0 : i32
    return %c0_i32, %arg1 : i32, i32
  }
  func.func @transform_3(%arg0: i32, %arg1: i32, %arg2: i32) -> (i32, i32) {
    %c0_i32 = arith.constant 0 : i32
    return %arg0, %arg1 : i32, i32
  }
}

module attributes {stable_mosaic.version = 11 : i64} {
  func.func @_flash_attn_kernel(%arg0: i32, %arg1: i32, %arg2: i32, %arg3: i32, %arg4: memref<1x1x8xf32, #tpu.memory_space<vmem>>, %arg5: memref<1x1x8x64xf32, #tpu.memory_space<vmem>>, %arg6: memref<1x1x8x64xf32, #tpu.memory_space<vmem>>, %arg7: memref<1x1x8x64xf32, #tpu.memory_space<vmem>>, %arg8: memref<1x1x8x64xf32, #tpu.memory_space<vmem>>, %arg9: memref<8x1xf32, #tpu.memory_space<vmem>>, %arg10: memref<8x1xf32, #tpu.memory_space<vmem>>, %arg11: memref<8x64xf32, #tpu.memory_space<vmem>>) attributes {dimension_semantics = [#tpu.dimension_semantics<parallel>, #tpu.dimension_semantics<parallel>, #tpu.dimension_semantics<parallel>, #tpu.dimension_semantics<arbitrary>], iteration_bounds = array<i64: 2, 2, 1, 1>, scalar_prefetch = 0 : i64, scratch_operands = 3 : i64, tpu.core_type = #tpu.core_type<tc>, window_params = [{transform_indices = @transform_0, window_bounds = array<i64: 1, 1, 8>}, {transform_indices = @transform_1, window_bounds = array<i64: 1, 1, 8, 64>}, {transform_indices = @transform_2, window_bounds = array<i64: 1, 1, 8, 64>}, {transform_indices = @transform_3, window_bounds = array<i64: 1, 1, 8, 64>}, {transform_indices = @transform_4, window_bounds = array<i64: 1, 1, 8, 64>}]} {
    %c0_i32 = arith.constant 0 : i32
    %0 = arith.cmpi eq, %arg3, %c0_i32 : i32
    %1 = arith.extui %0 : i1 to i32
    %c0_i32_0 = arith.constant 0 : i32
    %2 = arith.cmpi ne, %1, %c0_i32_0 : i32
    scf.if %2 {
      %cst_35 = arith.constant 0xFF800000 : f32
      %46 = vector.broadcast %cst_35 : f32 to vector<8x1xf32>
      %c0_36 = arith.constant 0 : index
      %c0_37 = arith.constant 0 : index
      %47 = vector.load %arg9[%c0_36, %c0_37] : memref<8x1xf32, #tpu.memory_space<vmem>>, vector<8x1xf32>
      tpu.vector_store %arg9[%c0_36, %c0_37], %46 {strides = array<i32>} : memref<8x1xf32, #tpu.memory_space<vmem>>, vector<8x1xf32>,
      %cst_38 = arith.constant 0.000000e+00 : f32
      %48 = vector.broadcast %cst_38 : f32 to vector<8x1xf32>
      %c0_39 = arith.constant 0 : index
      %c0_40 = arith.constant 0 : index
      %49 = vector.load %arg10[%c0_39, %c0_40] : memref<8x1xf32, #tpu.memory_space<vmem>>, vector<8x1xf32>
      tpu.vector_store %arg10[%c0_39, %c0_40], %48 {strides = array<i32>} : memref<8x1xf32, #tpu.memory_space<vmem>>, vector<8x1xf32>,
      %cst_41 = arith.constant 0.000000e+00 : f32
      %50 = vector.broadcast %cst_41 : f32 to vector<8x64xf32>
      %c0_42 = arith.constant 0 : index
      %c0_43 = arith.constant 0 : index
      %51 = vector.load %arg11[%c0_42, %c0_43] : memref<8x64xf32, #tpu.memory_space<vmem>>, vector<8x64xf32>
      tpu.vector_store %arg11[%c0_42, %c0_43], %50 {strides = array<i32>} : memref<8x64xf32, #tpu.memory_space<vmem>>, vector<8x64xf32>,
    } else {
    }
    %c0 = arith.constant 0 : index
    %c0_1 = arith.constant 0 : index
    %c0_2 = arith.constant 0 : index
    %c0_3 = arith.constant 0 : index
    %3 = vector.load %arg5[%c0, %c0_1, %c0_2, %c0_3] : memref<1x1x8x64xf32, #tpu.memory_space<vmem>>, vector<1x1x8x64xf32>
    %4 = vector.shape_cast %3 : vector<1x1x8x64xf32> to vector<8x64xf32>
    %5 = arith.truncf %4 : vector<8x64xf32> to vector<8x64xbf16>
    %c0_4 = arith.constant 0 : index
    %c0_5 = arith.constant 0 : index
    %c0_6 = arith.constant 0 : index
    %c0_7 = arith.constant 0 : index
    %6 = vector.load %arg6[%c0_4, %c0_5, %c0_6, %c0_7] : memref<1x1x8x64xf32, #tpu.memory_space<vmem>>, vector<1x1x8x64xf32>
    %7 = vector.shape_cast %6 : vector<1x1x8x64xf32> to vector<8x64xf32>
    %8 = arith.truncf %7 : vector<8x64xf32> to vector<8x64xbf16>
    %c0_8 = arith.constant 0 : index
    %c0_9 = arith.constant 0 : index
    %c0_10 = arith.constant 0 : index
    %c0_11 = arith.constant 0 : index
    %9 = vector.load %arg7[%c0_8, %c0_9, %c0_10, %c0_11] : memref<1x1x8x64xf32, #tpu.memory_space<vmem>>, vector<1x1x8x64xf32>
    %10 = vector.shape_cast %9 : vector<1x1x8x64xf32> to vector<8x64xf32>
    %11 = arith.truncf %10 : vector<8x64xf32> to vector<8x64xbf16>
    %c0_12 = arith.constant 0 : index
    %c0_13 = arith.constant 0 : index
    %c0_14 = arith.constant 0 : index
    %12 = vector.load %arg4[%c0_12, %c0_13, %c0_14] : memref<1x1x8xf32, #tpu.memory_space<vmem>>, vector<1x1x8xf32>
    %13 = vector.shape_cast %12 : vector<1x1x8xf32> to vector<1x8xf32>
    %cst = arith.constant dense<0.000000e+00> : vector<8x8xf32>
    %14 = tpu.matmul %5, %8, %cst {dimension_numbers = #tpu.dot_dimension_numbers<[1], [1], [0], [0], [0, 0, 1, 0], [], []>} : vector<8x64xbf16>, vector<8x64xbf16>, vector<8x8xf32> -> vector<8x8xf32>
    %cst_15 = arith.constant 1.250000e-01 : f32
    %15 = vector.broadcast %cst_15 : f32 to vector<8x8xf32>
    %16 = arith.mulf %14, %15 : vector<8x8xf32>
    %17 = vector.broadcast %13 : vector<1x8xf32> to vector<8x8xf32>
    %18 = arith.addf %16, %17 : vector<8x8xf32>
    %c0_16 = arith.constant 0 : index
    %c0_17 = arith.constant 0 : index
    %19 = vector.load %arg9[%c0_16, %c0_17] : memref<8x1xf32, #tpu.memory_space<vmem>>, vector<8x1xf32>
    %cst_18 = arith.constant dense<0xFF800000> : vector<8xf32>
    %20 = vector.multi_reduction <maximumf>, %18, %cst_18 [1] : vector<8x8xf32> to vector<8xf32>
    %21 = vector.shape_cast %20 : vector<8xf32> to vector<8x1xf32>
    %22 = arith.maximumf %19, %21 : vector<8x1xf32>
    %c0_19 = arith.constant 0 : index
    %c0_20 = arith.constant 0 : index
    %23 = vector.load %arg9[%c0_19, %c0_20] : memref<8x1xf32, #tpu.memory_space<vmem>>, vector<8x1xf32>
    %24 = arith.subf %23, %22 : vector<8x1xf32>
    %25 = math.exp %24 : vector<8x1xf32>
    %26 = vector.broadcast %22 : vector<8x1xf32> to vector<8x8xf32>
    %27 = arith.subf %18, %26 : vector<8x8xf32>
    %28 = math.exp %27 : vector<8x8xf32>
    %c0_21 = arith.constant 0 : index
    %c0_22 = arith.constant 0 : index
    %29 = vector.load %arg10[%c0_21, %c0_22] : memref<8x1xf32, #tpu.memory_space<vmem>>, vector<8x1xf32>
    %30 = arith.mulf %25, %29 : vector<8x1xf32>
    %cst_23 = arith.constant dense<0.000000e+00> : vector<8xf32>
    %31 = vector.multi_reduction <add>, %28, %cst_23 [1] : vector<8x8xf32> to vector<8xf32>
    %32 = vector.shape_cast %31 : vector<8xf32> to vector<8x1xf32>
    %33 = arith.addf %30, %32 : vector<8x1xf32>
    %c0_24 = arith.constant 0 : index
    %c0_25 = arith.constant 0 : index
    %34 = vector.load %arg10[%c0_24, %c0_25] : memref<8x1xf32, #tpu.memory_space<vmem>>, vector<8x1xf32>
    tpu.vector_store %arg10[%c0_24, %c0_25], %33 {strides = array<i32>} : memref<8x1xf32, #tpu.memory_space<vmem>>, vector<8x1xf32>,
    %c0_26 = arith.constant 0 : index
    %c0_27 = arith.constant 0 : index
    %35 = vector.load %arg11[%c0_26, %c0_27] : memref<8x64xf32, #tpu.memory_space<vmem>>, vector<8x64xf32>
    %36 = vector.broadcast %25 : vector<8x1xf32> to vector<8x64xf32>
    %37 = arith.mulf %36, %35 : vector<8x64xf32>
    %38 = arith.truncf %28 : vector<8x8xf32> to vector<8x8xbf16>
    %cst_28 = arith.constant dense<0.000000e+00> : vector<8x64xf32>
    %39 = tpu.matmul %38, %11, %cst_28 {dimension_numbers = #tpu.dot_dimension_numbers<[1], [0], [0], [1], [0, 0, 1, 1], [], []>} : vector<8x8xbf16>, vector<8x64xbf16>, vector<8x64xf32> -> vector<8x64xf32>
    %40 = arith.addf %37, %39 : vector<8x64xf32>
    %c0_29 = arith.constant 0 : index
    %c0_30 = arith.constant 0 : index
    %41 = vector.load %arg11[%c0_29, %c0_30] : memref<8x64xf32, #tpu.memory_space<vmem>>, vector<8x64xf32>
    tpu.vector_store %arg11[%c0_29, %c0_30], %40 {strides = array<i32>} : memref<8x64xf32, #tpu.memory_space<vmem>>, vector<8x64xf32>,
    %c0_31 = arith.constant 0 : index
    %c0_32 = arith.constant 0 : index
    %42 = vector.load %arg9[%c0_31, %c0_32] : memref<8x1xf32, #tpu.memory_space<vmem>>, vector<8x1xf32>
    tpu.vector_store %arg9[%c0_31, %c0_32], %22 {strides = array<i32>} : memref<8x1xf32, #tpu.memory_space<vmem>>, vector<8x1xf32>,
    %c0_i32_33 = arith.constant 0 : i32
    %43 = arith.cmpi eq, %arg3, %c0_i32_33 : i32
    %44 = arith.extui %43 : i1 to i32
    %c0_i32_34 = arith.constant 0 : i32
    %45 = arith.cmpi ne, %44, %c0_i32_34 : i32
    scf.if %45 {
      %c0_35 = arith.constant 0 : index
      %c0_36 = arith.constant 0 : index
      %46 = vector.load %arg11[%c0_35, %c0_36] : memref<8x64xf32, #tpu.memory_space<vmem>>, vector<8x64xf32>
      %c0_37 = arith.constant 0 : index
      %c0_38 = arith.constant 0 : index
      %47 = vector.load %arg10[%c0_37, %c0_38] : memref<8x1xf32, #tpu.memory_space<vmem>>, vector<8x1xf32>
      %48 = tpu.reciprocal %47 {approx = true} : vector<8x1xf32> -> vector<8x1xf32>
      %49 = vector.broadcast %48 : vector<8x1xf32> to vector<8x64xf32>
      %50 = arith.mulf %46, %49 : vector<8x64xf32>
      %c0_39 = arith.constant 0 : index
      %c0_40 = arith.constant 0 : index
      %c0_41 = arith.constant 0 : index
      %c0_42 = arith.constant 0 : index
      %51 = vector.load %arg8[%c0_39, %c0_40, %c0_41, %c0_42] : memref<1x1x8x64xf32, #tpu.memory_space<vmem>>, vector<1x1x8x64xf32>
      %52 = vector.shape_cast %51 : vector<1x1x8x64xf32> to vector<8x64xf32>
      %53 = vector.shape_cast %50 : vector<8x64xf32> to vector<1x1x8x64xf32>
      tpu.vector_store %arg8[%c0_39, %c0_40, %c0_41, %c0_42], %53 {strides = array<i32>} : memref<1x1x8x64xf32, #tpu.memory_space<vmem>>, vector<1x1x8x64xf32>,
    } else {
    }
    return
  }
  func.func @transform_0(%arg0: i32, %arg1: i32, %arg2: i32, %arg3: i32) -> (i32, i32, i32) {
    %c0_i32 = arith.constant 0 : i32
    %c0_i32_0 = arith.constant 0 : i32
    return %arg0, %c0_i32, %arg3 : i32, i32, i32
  }
  func.func @transform_1(%arg0: i32, %arg1: i32, %arg2: i32, %arg3: i32) -> (i32, i32, i32, i32) {
    %c0_i32 = arith.constant 0 : i32
    %c0_i32_0 = arith.constant 0 : i32
    return %arg0, %arg1, %arg2, %c0_i32 : i32, i32, i32, i32
  }
  func.func @transform_2(%arg0: i32, %arg1: i32, %arg2: i32, %arg3: i32) -> (i32, i32, i32, i32) {
    %c0_i32 = arith.constant 0 : i32
    %c0_i32_0 = arith.constant 0 : i32
    return %arg0, %arg1, %arg3, %c0_i32 : i32, i32, i32, i32
  }
  func.func @transform_3(%arg0: i32, %arg1: i32, %arg2: i32, %arg3: i32) -> (i32, i32, i32, i32) {
    %c0_i32 = arith.constant 0 : i32
    %c0_i32_0 = arith.constant 0 : i32
    return %arg0, %arg1, %arg3, %c0_i32 : i32, i32, i32, i32
  }
  func.func @transform_4(%arg0: i32, %arg1: i32, %arg2: i32, %arg3: i32) -> (i32, i32, i32, i32) {
    %c0_i32 = arith.constant 0 : i32
    %c0_i32_0 = arith.constant 0 : i32
    return %arg0, %arg1, %arg2, %c0_i32 : i32, i32, i32, i32
  }
}

module attributes {stable_mosaic.version = 11 : i64} {
  func.func @_add_layernorm_kernel(%arg0: i32, %arg1: memref<16x128xf32, #tpu.memory_space<vmem>>, %arg2: memref<16x128xf32, #tpu.memory_space<vmem>>, %arg3: memref<1x128xf32, #tpu.memory_space<vmem>>, %arg4: memref<1x128xf32, #tpu.memory_space<vmem>>, %arg5: memref<16x128xf32, #tpu.memory_space<vmem>>) attributes {dimension_semantics = [#tpu.dimension_semantics<parallel>], iteration_bounds = array<i64: 1>, scalar_prefetch = 0 : i64, scratch_operands = 0 : i64, tpu.core_type = #tpu.core_type<tc>, window_params = [{transform_indices = @transform_0, window_bounds = array<i64: 16, 128>}, {transform_indices = @transform_1, window_bounds = array<i64: 16, 128>}, {pipeline_mode = #tpu.pipeline_mode<synchronous>, transform_indices = @transform_2, window_bounds = array<i64: 1, 128>}, {pipeline_mode = #tpu.pipeline_mode<synchronous>, transform_indices = @transform_3, window_bounds = array<i64: 1, 128>}, {transform_indices = @transform_4, window_bounds = array<i64: 16, 128>}]} {
    %c0 = arith.constant 0 : index
    %c0_0 = arith.constant 0 : index
    %0 = vector.load %arg1[%c0, %c0_0] : memref<16x128xf32, #tpu.memory_space<vmem>>, vector<16x128xf32>
    %c0_1 = arith.constant 0 : index
    %c0_2 = arith.constant 0 : index
    %1 = vector.load %arg2[%c0_1, %c0_2] : memref<16x128xf32, #tpu.memory_space<vmem>>, vector<16x128xf32>
    %2 = arith.addf %0, %1 : vector<16x128xf32>
    %cst = arith.constant dense<0.000000e+00> : vector<16xf32>
    %3 = vector.multi_reduction <add>, %2, %cst [1] : vector<16x128xf32> to vector<16xf32>
    %4 = vector.shape_cast %3 : vector<16xf32> to vector<16x1xf32>
    %cst_3 = arith.constant 1.280000e+02 : f32
    %5 = vector.broadcast %cst_3 : f32 to vector<16x1xf32>
    %6 = arith.divf %4, %5 : vector<16x1xf32>
    %7 = vector.broadcast %6 : vector<16x1xf32> to vector<16x128xf32>
    %8 = arith.subf %2, %7 : vector<16x128xf32>
    %9 = arith.mulf %8, %8 : vector<16x128xf32>
    %cst_4 = arith.constant dense<0.000000e+00> : vector<16xf32>
    %10 = vector.multi_reduction <add>, %9, %cst_4 [1] : vector<16x128xf32> to vector<16xf32>
    %11 = vector.shape_cast %10 : vector<16xf32> to vector<16x1xf32>
    %cst_5 = arith.constant 1.280000e+02 : f32
    %12 = vector.broadcast %cst_5 : f32 to vector<16x1xf32>
    %13 = arith.divf %11, %12 : vector<16x1xf32>
    %14 = vector.broadcast %6 : vector<16x1xf32> to vector<16x128xf32>
    %15 = arith.subf %2, %14 : vector<16x128xf32>
    %cst_6 = arith.constant 9.99999996E-13 : f32
    %16 = vector.broadcast %cst_6 : f32 to vector<16x1xf32>
    %17 = arith.addf %13, %16 : vector<16x1xf32>
    %18 = math.rsqrt %17 : vector<16x1xf32>
    %19 = vector.broadcast %18 : vector<16x1xf32> to vector<16x128xf32>
    %20 = arith.mulf %15, %19 : vector<16x128xf32>
    %c0_7 = arith.constant 0 : index
    %c0_8 = arith.constant 0 : index
    %21 = vector.load %arg3[%c0_7, %c0_8] : memref<1x128xf32, #tpu.memory_space<vmem>>, vector<1x128xf32>
    %22 = vector.broadcast %21 : vector<1x128xf32> to vector<16x128xf32>
    %23 = arith.mulf %20, %22 : vector<16x128xf32>
    %c0_9 = arith.constant 0 : index
    %c0_10 = arith.constant 0 : index
    %24 = vector.load %arg4[%c0_9, %c0_10] : memref<1x128xf32, #tpu.memory_space<vmem>>, vector<1x128xf32>
    %25 = vector.broadcast %24 : vector<1x128xf32> to vector<16x128xf32>
    %26 = arith.addf %23, %25 : vector<16x128xf32>
    %c0_11 = arith.constant 0 : index
    %c0_12 = arith.constant 0 : index
    %27 = vector.load %arg5[%c0_11, %c0_12] : memref<16x128xf32, #tpu.memory_space<vmem>>, vector<16x128xf32>
    tpu.vector_store %arg5[%c0_11, %c0_12], %26 {strides = array<i32>} : memref<16x128xf32, #tpu.memory_space<vmem>>, vector<16x128xf32>,
    return
  }
  func.func @transform_0(%arg0: i32) -> (i32, i32) {
    %c0_i32 = arith.constant 0 : i32
    %c0_i32_0 = arith.constant 0 : i32
    return %arg0, %c0_i32 : i32, i32
  }
  func.func @transform_1(%arg0: i32) -> (i32, i32) {
    %c0_i32 = arith.constant 0 : i32
    %c0_i32_0 = arith.constant 0 : i32
    return %arg0, %c0_i32 : i32, i32
  }
  func.func @transform_2(%arg0: i32) -> (i32, i32) {
    %c0_i32 = arith.constant 0 : i32
    %c0_i32_0 = arith.constant 0 : i32
    %c0_i32_1 = arith.constant 0 : i32
    return %c0_i32, %c0_i32_0 : i32, i32
  }
  func.func @transform_3(%arg0: i32) -> (i32, i32) {
    %c0_i32 = arith.constant 0 : i32
    %c0_i32_0 = arith.constant 0 : i32
    %c0_i32_1 = arith.constant 0 : i32
    return %c0_i32, %c0_i32_0 : i32, i32
  }
  func.func @transform_4(%arg0: i32) -> (i32, i32) {
    %c0_i32 = arith.constant 0 : i32
    %c0_i32_0 = arith.constant 0 : i32
    return %arg0, %c0_i32 : i32, i32
  }
}

module attributes {stable_mosaic.version = 11 : i64} {
  func.func @_dense_kernel(%arg0: i32, %arg1: i32, %arg2: i32, %arg3: memref<16x128xf32, #tpu.memory_space<vmem>>, %arg4: memref<128x128xf32, #tpu.memory_space<vmem>>, %arg5: memref<1x128xf32, #tpu.memory_space<vmem>>, %arg6: memref<16x128xf32, #tpu.memory_space<vmem>>, %arg7: memref<16x128xf32, #tpu.memory_space<vmem>>) attributes {dimension_semantics = [#tpu.dimension_semantics<parallel>, #tpu.dimension_semantics<parallel>, #tpu.dimension_semantics<arbitrary>], iteration_bounds = array<i64: 1, 1, 1>, scalar_prefetch = 0 : i64, scratch_operands = 1 : i64, tpu.core_type = #tpu.core_type<tc>, window_params = [{transform_indices = @transform_0, window_bounds = array<i64: 16, 128>}, {transform_indices = @transform_1, window_bounds = array<i64: 128, 128>}, {transform_indices = @transform_2, window_bounds = array<i64: 1, 128>}, {transform_indices = @transform_3, window_bounds = array<i64: 16, 128>}]} {
    %c0_i32 = arith.constant 0 : i32
    %0 = arith.cmpi eq, %arg2, %c0_i32 : i32
    %1 = arith.extui %0 : i1 to i32
    %c0_i32_0 = arith.constant 0 : i32
    %2 = arith.cmpi ne, %1, %c0_i32_0 : i32
    scf.if %2 {
      %cst_10 = arith.constant 0.000000e+00 : f32
      %14 = vector.broadcast %cst_10 : f32 to vector<16x128xf32>
      %c0_11 = arith.constant 0 : index
      %c0_12 = arith.constant 0 : index
      %15 = vector.load %arg7[%c0_11, %c0_12] : memref<16x128xf32, #tpu.memory_space<vmem>>, vector<16x128xf32>
      tpu.vector_store %arg7[%c0_11, %c0_12], %14 {strides = array<i32>} : memref<16x128xf32, #tpu.memory_space<vmem>>, vector<16x128xf32>,
    } else {
    }
    %c0 = arith.constant 0 : index
    %c0_1 = arith.constant 0 : index
    %3 = vector.load %arg7[%c0, %c0_1] : memref<16x128xf32, #tpu.memory_space<vmem>>, vector<16x128xf32>
    %c0_2 = arith.constant 0 : index
    %c0_3 = arith.constant 0 : index
    %4 = vector.load %arg3[%c0_2, %c0_3] : memref<16x128xf32, #tpu.memory_space<vmem>>, vector<16x128xf32>
    %5 = arith.truncf %4 : vector<16x128xf32> to vector<16x128xbf16>
    %c0_4 = arith.constant 0 : index
    %c0_5 = arith.constant 0 : index
    %6 = vector.load %arg4[%c0_4, %c0_5] : memref<128x128xf32, #tpu.memory_space<vmem>>, vector<128x128xf32>
    %7 = arith.truncf %6 : vector<128x128xf32> to vector<128x128xbf16>
    %cst = arith.constant dense<0.000000e+00> : vector<16x128xf32>
    %8 = tpu.matmul %5, %7, %cst {dimension_numbers = #tpu.dot_dimension_numbers<[1], [0], [0], [1], [0, 0, 1, 1], [], []>} : vector<16x128xbf16>, vector<128x128xbf16>, vector<16x128xf32> -> vector<16x128xf32>
    %9 = arith.addf %3, %8 : vector<16x128xf32>
    %c0_6 = arith.constant 0 : index
    %c0_7 = arith.constant 0 : index
    %10 = vector.load %arg7[%c0_6, %c0_7] : memref<16x128xf32, #tpu.memory_space<vmem>>, vector<16x128xf32>
    tpu.vector_store %arg7[%c0_6, %c0_7], %9 {strides = array<i32>} : memref<16x128xf32, #tpu.memory_space<vmem>>, vector<16x128xf32>,
    %c0_i32_8 = arith.constant 0 : i32
    %11 = arith.cmpi eq, %arg2, %c0_i32_8 : i32
    %12 = arith.extui %11 : i1 to i32
    %c0_i32_9 = arith.constant 0 : i32
    %13 = arith.cmpi ne, %12, %c0_i32_9 : i32
    scf.if %13 {
      %c0_10 = arith.constant 0 : index
      %c0_11 = arith.constant 0 : index
      %14 = vector.load %arg7[%c0_10, %c0_11] : memref<16x128xf32, #tpu.memory_space<vmem>>, vector<16x128xf32>
      %c0_12 = arith.constant 0 : index
      %c0_13 = arith.constant 0 : index
      %15 = vector.load %arg5[%c0_12, %c0_13] : memref<1x128xf32, #tpu.memory_space<vmem>>, vector<1x128xf32>
      %16 = vector.broadcast %15 : vector<1x128xf32> to vector<16x128xf32>
      %17 = arith.addf %14, %16 : vector<16x128xf32>
      %c0_14 = arith.constant 0 : index
      %c0_15 = arith.constant 0 : index
      %18 = vector.load %arg6[%c0_14, %c0_15] : memref<16x128xf32, #tpu.memory_space<vmem>>, vector<16x128xf32>
      tpu.vector_store %arg6[%c0_14, %c0_15], %17 {strides = array<i32>} : memref<16x128xf32, #tpu.memory_space<vmem>>, vector<16x128xf32>,
    } else {
    }
    return
  }
  func.func @transform_0(%arg0: i32, %arg1: i32, %arg2: i32) -> (i32, i32) {
    %c0_i32 = arith.constant 0 : i32
    return %arg0, %arg2 : i32, i32
  }
  func.func @transform_1(%arg0: i32, %arg1: i32, %arg2: i32) -> (i32, i32) {
    %c0_i32 = arith.constant 0 : i32
    return %arg2, %arg1 : i32, i32
  }
  func.func @transform_2(%arg0: i32, %arg1: i32, %arg2: i32) -> (i32, i32) {
    %c0_i32 = arith.constant 0 : i32
    %c0_i32_0 = arith.constant 0 : i32
    return %c0_i32, %arg1 : i32, i32
  }
  func.func @transform_3(%arg0: i32, %arg1: i32, %arg2: i32) -> (i32, i32) {
    %c0_i32 = arith.constant 0 : i32
    return %arg0, %arg1 : i32, i32
  }
}

module attributes {stable_mosaic.version = 11 : i64} {
  func.func @_dense_kernel(%arg0: i32, %arg1: i32, %arg2: i32, %arg3: memref<16x128xf32, #tpu.memory_space<vmem>>, %arg4: memref<128x256xf32, #tpu.memory_space<vmem>>, %arg5: memref<1x256xf32, #tpu.memory_space<vmem>>, %arg6: memref<16x256xf32, #tpu.memory_space<vmem>>, %arg7: memref<16x256xf32, #tpu.memory_space<vmem>>) attributes {dimension_semantics = [#tpu.dimension_semantics<parallel>, #tpu.dimension_semantics<parallel>, #tpu.dimension_semantics<arbitrary>], iteration_bounds = array<i64: 1, 2, 1>, scalar_prefetch = 0 : i64, scratch_operands = 1 : i64, tpu.core_type = #tpu.core_type<tc>, window_params = [{transform_indices = @transform_0, window_bounds = array<i64: 16, 128>}, {transform_indices = @transform_1, window_bounds = array<i64: 128, 256>}, {transform_indices = @transform_2, window_bounds = array<i64: 1, 256>}, {transform_indices = @transform_3, window_bounds = array<i64: 16, 256>}]} {
    %c0_i32 = arith.constant 0 : i32
    %0 = arith.cmpi eq, %arg2, %c0_i32 : i32
    %1 = arith.extui %0 : i1 to i32
    %c0_i32_0 = arith.constant 0 : i32
    %2 = arith.cmpi ne, %1, %c0_i32_0 : i32
    scf.if %2 {
      %cst_10 = arith.constant 0.000000e+00 : f32
      %14 = vector.broadcast %cst_10 : f32 to vector<16x256xf32>
      %c0_11 = arith.constant 0 : index
      %c0_12 = arith.constant 0 : index
      %15 = vector.load %arg7[%c0_11, %c0_12] : memref<16x256xf32, #tpu.memory_space<vmem>>, vector<16x256xf32>
      tpu.vector_store %arg7[%c0_11, %c0_12], %14 {strides = array<i32>} : memref<16x256xf32, #tpu.memory_space<vmem>>, vector<16x256xf32>,
    } else {
    }
    %c0 = arith.constant 0 : index
    %c0_1 = arith.constant 0 : index
    %3 = vector.load %arg7[%c0, %c0_1] : memref<16x256xf32, #tpu.memory_space<vmem>>, vector<16x256xf32>
    %c0_2 = arith.constant 0 : index
    %c0_3 = arith.constant 0 : index
    %4 = vector.load %arg3[%c0_2, %c0_3] : memref<16x128xf32, #tpu.memory_space<vmem>>, vector<16x128xf32>
    %5 = arith.truncf %4 : vector<16x128xf32> to vector<16x128xbf16>
    %c0_4 = arith.constant 0 : index
    %c0_5 = arith.constant 0 : index
    %6 = vector.load %arg4[%c0_4, %c0_5] : memref<128x256xf32, #tpu.memory_space<vmem>>, vector<128x256xf32>
    %7 = arith.truncf %6 : vector<128x256xf32> to vector<128x256xbf16>
    %cst = arith.constant dense<0.000000e+00> : vector<16x256xf32>
    %8 = tpu.matmul %5, %7, %cst {dimension_numbers = #tpu.dot_dimension_numbers<[1], [0], [0], [1], [0, 0, 1, 1], [], []>} : vector<16x128xbf16>, vector<128x256xbf16>, vector<16x256xf32> -> vector<16x256xf32>
    %9 = arith.addf %3, %8 : vector<16x256xf32>
    %c0_6 = arith.constant 0 : index
    %c0_7 = arith.constant 0 : index
    %10 = vector.load %arg7[%c0_6, %c0_7] : memref<16x256xf32, #tpu.memory_space<vmem>>, vector<16x256xf32>
    tpu.vector_store %arg7[%c0_6, %c0_7], %9 {strides = array<i32>} : memref<16x256xf32, #tpu.memory_space<vmem>>, vector<16x256xf32>,
    %c0_i32_8 = arith.constant 0 : i32
    %11 = arith.cmpi eq, %arg2, %c0_i32_8 : i32
    %12 = arith.extui %11 : i1 to i32
    %c0_i32_9 = arith.constant 0 : i32
    %13 = arith.cmpi ne, %12, %c0_i32_9 : i32
    scf.if %13 {
      %c0_10 = arith.constant 0 : index
      %c0_11 = arith.constant 0 : index
      %14 = vector.load %arg7[%c0_10, %c0_11] : memref<16x256xf32, #tpu.memory_space<vmem>>, vector<16x256xf32>
      %c0_12 = arith.constant 0 : index
      %c0_13 = arith.constant 0 : index
      %15 = vector.load %arg5[%c0_12, %c0_13] : memref<1x256xf32, #tpu.memory_space<vmem>>, vector<1x256xf32>
      %16 = vector.broadcast %15 : vector<1x256xf32> to vector<16x256xf32>
      %17 = arith.addf %14, %16 : vector<16x256xf32>
      %18 = arith.mulf %17, %17 : vector<16x256xf32>
      %19 = arith.mulf %17, %18 : vector<16x256xf32>
      %cst_14 = arith.constant 4.471500e-02 : f32
      %20 = vector.broadcast %cst_14 : f32 to vector<16x256xf32>
      %21 = arith.mulf %20, %19 : vector<16x256xf32>
      %22 = arith.addf %17, %21 : vector<16x256xf32>
      %cst_15 = arith.constant 0.797884583 : f32
      %23 = vector.broadcast %cst_15 : f32 to vector<16x256xf32>
      %24 = arith.mulf %23, %22 : vector<16x256xf32>
      %25 = math.tanh %24 : vector<16x256xf32>
      %cst_16 = arith.constant 1.000000e+00 : f32
      %26 = vector.broadcast %cst_16 : f32 to vector<16x256xf32>
      %27 = arith.addf %26, %25 : vector<16x256xf32>
      %cst_17 = arith.constant 5.000000e-01 : f32
      %28 = vector.broadcast %cst_17 : f32 to vector<16x256xf32>
      %29 = arith.mulf %28, %27 : vector<16x256xf32>
      %30 = arith.mulf %17, %29 : vector<16x256xf32>
      %c0_18 = arith.constant 0 : index
      %c0_19 = arith.constant 0 : index
      %31 = vector.load %arg6[%c0_18, %c0_19] : memref<16x256xf32, #tpu.memory_space<vmem>>, vector<16x256xf32>
      tpu.vector_store %arg6[%c0_18, %c0_19], %30 {strides = array<i32>} : memref<16x256xf32, #tpu.memory_space<vmem>>, vector<16x256xf32>,
    } else {
    }
    return
  }
  func.func @transform_0(%arg0: i32, %arg1: i32, %arg2: i32) -> (i32, i32) {
    %c0_i32 = arith.constant 0 : i32
    return %arg0, %arg2 : i32, i32
  }
  func.func @transform_1(%arg0: i32, %arg1: i32, %arg2: i32) -> (i32, i32) {
    %c0_i32 = arith.constant 0 : i32
    return %arg2, %arg1 : i32, i32
  }
  func.func @transform_2(%arg0: i32, %arg1: i32, %arg2: i32) -> (i32, i32) {
    %c0_i32 = arith.constant 0 : i32
    %c0_i32_0 = arith.constant 0 : i32
    return %c0_i32, %arg1 : i32, i32
  }
  func.func @transform_3(%arg0: i32, %arg1: i32, %arg2: i32) -> (i32, i32) {
    %c0_i32 = arith.constant 0 : i32
    return %arg0, %arg1 : i32, i32
  }
}

module attributes {stable_mosaic.version = 11 : i64} {
  func.func @_merge_pair_kernel(%arg0: i32, %arg1: i32, %arg2: memref<1x4x8xf32, #tpu.memory_space<vmem>>, %arg3: memref<1x1x8x128xf32, #tpu.memory_space<vmem>>, %arg4: memref<1x1x4x128xf32, #tpu.memory_space<vmem>>) attributes {dimension_semantics = [#tpu.dimension_semantics<parallel>, #tpu.dimension_semantics<parallel>], iteration_bounds = array<i64: 2, 2>, scalar_prefetch = 0 : i64, scratch_operands = 0 : i64, tpu.core_type = #tpu.core_type<tc>, window_params = [{transform_indices = @transform_0, window_bounds = array<i64: 1, 4, 8>}, {transform_indices = @transform_1, window_bounds = array<i64: 1, 1, 8, 128>}, {transform_indices = @transform_2, window_bounds = array<i64: 1, 1, 4, 128>}]} {
    %c0 = arith.constant 0 : index
    %c0_0 = arith.constant 0 : index
    %c0_1 = arith.constant 0 : index
    %0 = vector.load %arg2[%c0, %c0_0, %c0_1] : memref<1x4x8xf32, #tpu.memory_space<vmem>>, vector<1x4x8xf32>
    %1 = vector.shape_cast %0 : vector<1x4x8xf32> to vector<4x8xf32>
    %2 = arith.truncf %1 : vector<4x8xf32> to vector<4x8xbf16>
    %c0_2 = arith.constant 0 : index
    %c0_3 = arith.constant 0 : index
    %c0_4 = arith.constant 0 : index
    %c0_5 = arith.constant 0 : index
    %3 = vector.load %arg3[%c0_2, %c0_3, %c0_4, %c0_5] : memref<1x1x8x128xf32, #tpu.memory_space<vmem>>, vector<1x1x8x128xf32>
    %4 = vector.shape_cast %3 : vector<1x1x8x128xf32> to vector<8x128xf32>
    %5 = arith.truncf %4 : vector<8x128xf32> to vector<8x128xbf16>
    %cst = arith.constant dense<0.000000e+00> : vector<4x128xf32>
    %6 = tpu.matmul %2, %5, %cst {dimension_numbers = #tpu.dot_dimension_numbers<[1], [0], [0], [1], [0, 0, 1, 1], [], []>} : vector<4x8xbf16>, vector<8x128xbf16>, vector<4x128xf32> -> vector<4x128xf32>
    %c0_6 = arith.constant 0 : index
    %c0_7 = arith.constant 0 : index
    %c0_8 = arith.constant 0 : index
    %c0_9 = arith.constant 0 : index
    %7 = vector.load %arg4[%c0_6, %c0_7, %c0_8, %c0_9] : memref<1x1x4x128xf32, #tpu.memory_space<vmem>>, vector<1x1x4x128xf32>
    %8 = vector.shape_cast %7 : vector<1x1x4x128xf32> to vector<4x128xf32>
    %9 = vector.shape_cast %6 : vector<4x128xf32> to vector<1x1x4x128xf32>
    tpu.vector_store %arg4[%c0_6, %c0_7, %c0_8, %c0_9], %9 {strides = array<i32>} : memref<1x1x4x128xf32, #tpu.memory_space<vmem>>, vector<1x1x4x128xf32>,
    return
  }
  func.func @transform_0(%arg0: i32, %arg1: i32) -> (i32, i32, i32) {
    %c0_i32 = arith.constant 0 : i32
    %c0_i32_0 = arith.constant 0 : i32
    %c0_i32_1 = arith.constant 0 : i32
    return %arg1, %c0_i32, %c0_i32_0 : i32, i32, i32
  }
  func.func @transform_1(%arg0: i32, %arg1: i32) -> (i32, i32, i32, i32) {
    %c0_i32 = arith.constant 0 : i32
    %c0_i32_0 = arith.constant 0 : i32
    %c0_i32_1 = arith.constant 0 : i32
    return %arg0, %arg1, %c0_i32, %c0_i32_0 : i32, i32, i32, i32
  }
  func.func @transform_2(%arg0: i32, %arg1: i32) -> (i32, i32, i32, i32) {
    %c0_i32 = arith.constant 0 : i32
    %c0_i32_0 = arith.constant 0 : i32
    %c0_i32_1 = arith.constant 0 : i32
    return %arg0, %arg1, %c0_i32, %c0_i32_0 : i32, i32, i32, i32
  }
}

module attributes {stable_mosaic.version = 11 : i64} {
  func.func @_dense_kernel(%arg0: i32, %arg1: i32, %arg2: i32, %arg3: memref<16x512xf32, #tpu.memory_space<vmem>>, %arg4: memref<512x128xf32, #tpu.memory_space<vmem>>, %arg5: memref<1x128xf32, #tpu.memory_space<vmem>>, %arg6: memref<16x128xf32, #tpu.memory_space<vmem>>, %arg7: memref<16x128xf32, #tpu.memory_space<vmem>>) attributes {dimension_semantics = [#tpu.dimension_semantics<parallel>, #tpu.dimension_semantics<parallel>, #tpu.dimension_semantics<arbitrary>], iteration_bounds = array<i64: 1, 1, 1>, scalar_prefetch = 0 : i64, scratch_operands = 1 : i64, tpu.core_type = #tpu.core_type<tc>, window_params = [{transform_indices = @transform_0, window_bounds = array<i64: 16, 512>}, {transform_indices = @transform_1, window_bounds = array<i64: 512, 128>}, {transform_indices = @transform_2, window_bounds = array<i64: 1, 128>}, {transform_indices = @transform_3, window_bounds = array<i64: 16, 128>}]} {
    %c0_i32 = arith.constant 0 : i32
    %0 = arith.cmpi eq, %arg2, %c0_i32 : i32
    %1 = arith.extui %0 : i1 to i32
    %c0_i32_0 = arith.constant 0 : i32
    %2 = arith.cmpi ne, %1, %c0_i32_0 : i32
    scf.if %2 {
      %cst_10 = arith.constant 0.000000e+00 : f32
      %14 = vector.broadcast %cst_10 : f32 to vector<16x128xf32>
      %c0_11 = arith.constant 0 : index
      %c0_12 = arith.constant 0 : index
      %15 = vector.load %arg7[%c0_11, %c0_12] : memref<16x128xf32, #tpu.memory_space<vmem>>, vector<16x128xf32>
      tpu.vector_store %arg7[%c0_11, %c0_12], %14 {strides = array<i32>} : memref<16x128xf32, #tpu.memory_space<vmem>>, vector<16x128xf32>,
    } else {
    }
    %c0 = arith.constant 0 : index
    %c0_1 = arith.constant 0 : index
    %3 = vector.load %arg7[%c0, %c0_1] : memref<16x128xf32, #tpu.memory_space<vmem>>, vector<16x128xf32>
    %c0_2 = arith.constant 0 : index
    %c0_3 = arith.constant 0 : index
    %4 = vector.load %arg3[%c0_2, %c0_3] : memref<16x512xf32, #tpu.memory_space<vmem>>, vector<16x512xf32>
    %5 = arith.truncf %4 : vector<16x512xf32> to vector<16x512xbf16>
    %c0_4 = arith.constant 0 : index
    %c0_5 = arith.constant 0 : index
    %6 = vector.load %arg4[%c0_4, %c0_5] : memref<512x128xf32, #tpu.memory_space<vmem>>, vector<512x128xf32>
    %7 = arith.truncf %6 : vector<512x128xf32> to vector<512x128xbf16>
    %cst = arith.constant dense<0.000000e+00> : vector<16x128xf32>
    %8 = tpu.matmul %5, %7, %cst {dimension_numbers = #tpu.dot_dimension_numbers<[1], [0], [0], [1], [0, 0, 1, 1], [], []>} : vector<16x512xbf16>, vector<512x128xbf16>, vector<16x128xf32> -> vector<16x128xf32>
    %9 = arith.addf %3, %8 : vector<16x128xf32>
    %c0_6 = arith.constant 0 : index
    %c0_7 = arith.constant 0 : index
    %10 = vector.load %arg7[%c0_6, %c0_7] : memref<16x128xf32, #tpu.memory_space<vmem>>, vector<16x128xf32>
    tpu.vector_store %arg7[%c0_6, %c0_7], %9 {strides = array<i32>} : memref<16x128xf32, #tpu.memory_space<vmem>>, vector<16x128xf32>,
    %c0_i32_8 = arith.constant 0 : i32
    %11 = arith.cmpi eq, %arg2, %c0_i32_8 : i32
    %12 = arith.extui %11 : i1 to i32
    %c0_i32_9 = arith.constant 0 : i32
    %13 = arith.cmpi ne, %12, %c0_i32_9 : i32
    scf.if %13 {
      %c0_10 = arith.constant 0 : index
      %c0_11 = arith.constant 0 : index
      %14 = vector.load %arg7[%c0_10, %c0_11] : memref<16x128xf32, #tpu.memory_space<vmem>>, vector<16x128xf32>
      %c0_12 = arith.constant 0 : index
      %c0_13 = arith.constant 0 : index
      %15 = vector.load %arg5[%c0_12, %c0_13] : memref<1x128xf32, #tpu.memory_space<vmem>>, vector<1x128xf32>
      %16 = vector.broadcast %15 : vector<1x128xf32> to vector<16x128xf32>
      %17 = arith.addf %14, %16 : vector<16x128xf32>
      %c0_14 = arith.constant 0 : index
      %c0_15 = arith.constant 0 : index
      %18 = vector.load %arg6[%c0_14, %c0_15] : memref<16x128xf32, #tpu.memory_space<vmem>>, vector<16x128xf32>
      tpu.vector_store %arg6[%c0_14, %c0_15], %17 {strides = array<i32>} : memref<16x128xf32, #tpu.memory_space<vmem>>, vector<16x128xf32>,
    } else {
    }
    return
  }
  func.func @transform_0(%arg0: i32, %arg1: i32, %arg2: i32) -> (i32, i32) {
    %c0_i32 = arith.constant 0 : i32
    return %arg0, %arg2 : i32, i32
  }
  func.func @transform_1(%arg0: i32, %arg1: i32, %arg2: i32) -> (i32, i32) {
    %c0_i32 = arith.constant 0 : i32
    return %arg2, %arg1 : i32, i32
  }
  func.func @transform_2(%arg0: i32, %arg1: i32, %arg2: i32) -> (i32, i32) {
    %c0_i32 = arith.constant 0 : i32
    %c0_i32_0 = arith.constant 0 : i32
    return %c0_i32, %arg1 : i32, i32
  }
  func.func @transform_3(%arg0: i32, %arg1: i32, %arg2: i32) -> (i32, i32) {
    %c0_i32 = arith.constant 0 : i32
    return %arg0, %arg1 : i32, i32
  }
}

</mosaic_0001>

<bundles_post_ra>
// kernel: _lambda_.25
= control target key start
LH: loop header
LB: loop body
LE: loop exit
PB: predicated region body
PF: predicated region fallthrough
CT: control target
= control target key end

     0   :  { %vm16_vm0 = vcmask 523264   ;;  %s118_s0 = inlined_call_operand.vmem [shape: f32[16,64], index: 0, kind: input, shape index: {}]   ;;  %s119_s1 = inlined_call_operand.vmem [shape: f32[1,64], index: 1, kind: input, shape index: {}]   ;;  %s120_s2 = inlined_call_operand.vmem [shape: f32[1,64], index: 2, kind: input, shape index: {}]   ;;  %s121_s3 = inlined_call_operand.vmem [shape: f32[16,64], index: 3, kind: output, shape index: {}]  }
   0x1   :  { %v14_v0 = vld [vmem:[%s118_s0] sm:$0xff]  ;;  %v15_v1 = vld [vmem:[%s118_s0 + $0x8] sm:$0xff] }
   0x2   :  { %v17_v2 = vsel %vm16_vm0, %v14_v0, 0.0  ;;  %v20_v3 = vsel %vm16_vm0, %v15_v1, 0.0  ;;  %v68_v21 = vld [vmem:[%s119_s1] ss:$0 sm:$0xff] }
   0x3   :  { %18 = vadd.xlane.f32.xlu0 %v17_v2  ;;  %v69_v23 = vld [vmem:[%s120_s2] ss:$0 sm:$0xff] }
   0x7   :  { %21 = vadd.xlane.f32.xlu0 %v20_v3 }
  0x90   :  { %v19_v4 = vpop.xlane.xlu0 %18 }
  0x91   :  { %v24_v5 = vmul.f32 0.015625, %v19_v4 }
  0x93   :  { %v26_v6 = vsub.f32 %v14_v0, %v24_v5 }
  0x94   :  { %v22_v7 = vpop.xlane.xlu0 %21 }
  0x95   :  { %v25_v8 = vmul.f32 0.015625, %v22_v7  ;;  %v28_v9 = vmul.f32 %v26_v6, %v26_v6 }
  0x97   :  { %v27_v10 = vsub.f32 %v15_v1, %v25_v8  ;;  %v30_v11 = vsel %vm16_vm0, %v28_v9, 0.0 }
  0x98   :  { %31 = vadd.xlane.f32.xlu1 %v30_v11 }
  0x99   :  { %v29_v12 = vmul.f32 %v27_v10, %v27_v10 }
  0x9b   :  { %v33_v13 = vsel %vm16_vm0, %v29_v12, 0.0 }
  0x9c   :  { %34 = vadd.xlane.f32.xlu1 %v33_v13 }
 0x125   :  { %v32_v14 = vpop.xlane.xlu1 %31 }
 0x126   :  { %v36_v15 = vmul.f32 0.015625, %v32_v14 }
 0x128   :  { %v38_v16 = vadd.f32 1e-12, %v36_v15 }
 0x129   :  { %v35_v17 = vpop.xlane.xlu1 %34 }
 0x12a   :  { %70 = vrsqrt.f32 %v38_v16  ;;  %v37_v18 = vmul.f32 0.015625, %v35_v17 }
 0x12c   :  { %v39_v19 = vadd.f32 1e-12, %v37_v18 }
 0x12e   :  { %72 = vrsqrt.f32 %v39_v19 }
 0x134   :  { %v71_v20 = vpop.eup %70 }
 0x135   :  { %v42_v22 = vmul.f32 %v71_v20, %v26_v6 }
 0x137   :  { %v51_v24 = vmul.f32 %v68_v21, %v42_v22 }
 0x138   :  { %v73_v25 = vpop.eup %72 }
 0x139   :  { %v60_v26 = vadd.f32 %v69_v23, %v51_v24  ;;  %v43_v27 = vmul.f32 %v73_v25, %v27_v10 }
 0x13b   :  { %62 = vst.msk [vmem:[%s121_s3] sm:$0xff] %vm16_vm0, %v60_v26  ;;  %v52_v28 = vmul.f32 %v68_v21, %v43_v27 }
 0x13d   :  { %v61_v29 = vadd.f32 %v69_v23, %v52_v28 }
 0x13f   :  { %63 = vst.msk [vmem:[%s121_s3 + $0x8] sm:$0xff] %vm16_vm0, %v61_v29 }

// kernel: _lambda_.27
= control target key start
LH: loop header
LB: loop body
LE: loop exit
PB: predicated region body
PF: predicated region fallthrough
CT: control target
= control target key end

     0   :  { %v128_v0 = vmov 0.0   ;;  %vm129_vm0 = vmmov 0   ;;  %vm38_vm1 = vcmask 523264   ;;  %s189_s1 = inlined_call_operand.vmem [shape: f32[64,128], index: 1, kind: input, shape index: {}]   ;;  %s190_s0 = inlined_call_operand.vmem [shape: f32[16,64], index: 0, kind: input, shape index: {}]   ;;  %s191_s2 = inlined_call_operand.vmem [shape: f32[1,128], index: 2, kind: input, shape index: {}]   ;;  %s192_s3 = inlined_call_operand.vmem [shape: f32[16,128], index: 3, kind: output, shape index: {}]  }
   0x1   :  { %114 = vmatprep.subr.bf16.mxu0 %v128_v0  ;;  %v26_v1 = vld [vmem:[%s189_s1] sm:$0xff]  ;;  %v27_v2 = vld [vmem:[%s189_s1 + $0x8] sm:$0xff]  ;;  %v28_v3 = vld [vmem:[%s189_s1 + $0x10] sm:$0xff]  ;;  %122 = vmatprep.mubr.msk.bf16.mxu0 %vm129_vm0, %v128_v0 }
   0x2   :  { %v34_v4 = vpack.c.bf16 %v27_v2, %v26_v1  ;;  %v29_v5 = vld [vmem:[%s189_s1 + $0x18] sm:$0xff]  ;;  %v30_v7 = vld [vmem:[%s189_s1 + $0x20] sm:$0xff]  ;;  %v31_v8 = vld [vmem:[%s189_s1 + $0x28] sm:$0xff] }
   0x3   :  { %v35_v6 = vpack.c.bf16 %v29_v5, %v28_v3  ;;  %v36_v9 = vpack.c.bf16 %v31_v8, %v30_v7  ;;  %v32_v10 = vld [vmem:[%s189_s1 + $0x30] sm:$0xff]  ;;  %v33_v11 = vld [vmem:[%s189_s1 + $0x38] sm:$0xff]  ;;  %v23_v13 = vld [vmem:[%s190_s0] sm:$0xff] }
   0x4   :  { %115 = vmatpush3.bf16.msra.mxu0 %v34_v4  ;;  %v37_v12 = vpack.c.bf16 %v33_v11, %v32_v10  ;;  %v24_v14 = vld [vmem:[%s190_s0 + $0x8] sm:$0xff]  ;;  %v108_v16 = vld [vmem:[%s191_s2] ss:$0 sm:$0xff] }
   0x5   :  { %116 = vmatprep.subr.bf16.mxu0 %v128_v0  ;;  %v25_v15 = vpack.c.bf16 %v24_v14, %v23_v13 }
   0x8   :  { %117 = vmatpush3.bf16.msra.mxu0 %v35_v6 }
   0x9   :  { %118 = vmatprep.subr.bf16.mxu0 %v128_v0 }
   0xc   :  { %119 = vmatpush3.bf16.msra.mxu0 %v36_v9 }
   0xd   :  { %120 = vmatprep.subr.bf16.mxu0 %v128_v0 }
  0x10   :  { %121 = vmatpush3.bf16.msra.mxu0 %v37_v12 }
  0x13   :  { %123 = vmatmul.mubr.msk.bf16.vlgmr.msra.gmra.mrb[0].mxu0 %vm38_vm1, %v25_v15 }
  0xe6   :  { %v76_v17 = vpop.f32.mrb[0].mxu0 }
  0xe7   :  { %v99_v18 = vadd.f32 %v108_v16, %v76_v17  ;;  %v124_v19 = vpop.f32.mrb[1].mxu0 }
  0xe8   :  { %v79_v20 = vpop.f32.mrb[2].mxu0 }
  0xe9   :  { %101 = vst [vmem:[%s192_s3] sm:$0xff] %v99_v18  ;;  %v100_v21 = vadd.f32 %v108_v16, %v79_v20  ;;  %v125_v22 = vpop.f32.mrb[3].mxu0 }
  0xeb   :  { %102 = vst [vmem:[%s192_s3 + $0x8] sm:$0xff] %v100_v21 }

// kernel: _lambda_.28
= control target key start
LH: loop header
LB: loop body
LE: loop exit
PB: predicated region body
PF: predicated region fallthrough
CT: control target
= control target key end

     0   :  { %s726_s12 = smov 0   ;;  %s728_s13 = smov 0   ;;  %s849_s0 = inlined_call_operand.vmem [shape: f32[16,128], index: 0, kind: input, shape index: {}]   ;;  %s850_s1 = inlined_call_operand.vmem [shape: f32[128,384], index: 1, kind: input, shape index: {}]   ;;  %s851_s2 = inlined_call_operand.vmem [shape: f32[1,384], index: 2, kind: input, shape index: {}]   ;;  %s852_s3 = inlined_call_operand.vmem [shape: f32[16,384], index: 3, kind: output, shape index: {}]  }
   0x1   :  { %s730_s14 = smov 0   ;;  %s732_s15 = smov 0  }
   0x2   :  { %s734_s16 = smov 0  }
   0x3 LB: > { %s28_s17 = sadd.s32 1, %s698_s15  ;;  %s578_s18 = sadd.s32 4294967295, %s702_s16   ;;  %s702_s16 = sphi %s734_s16, %s13_s16   ;;  %s698_s15 = sphi %s732_s15, %s857_s15   ;;  %s694_s14 = sphi %s730_s14, %s856_s14   ;;  %s690_s13 = sphi %s728_s13, %s855_s13   ;;  %s686_s12 = sphi %s726_s12, %s854_s12  }
   0x4   : > { %p30_p0 = scmp.ge.s32.totalorder %s28_s17, 3  ;;  %p76_p1 = scmp.ne.s32.totalorder %s690_s13, %s686_s12 }
   0x5   : > { %p77_p2 = scmp.eq.s32.totalorder %s702_s16, 0  ;;  %p134_p4 = scmp.eq.s32.totalorder %s578_s18, 2 }
   0x6   : > { %s859_s17 = smov (%p30_p0, %s28_s17), 0  ;;  %s69_s20 = sadd.s32 1, %s690_s13 }
   0x7   : > { %p78_p3 = por %p77_p2, %p76_p1  ;;  %s65_s19 = ssub.s32 %s698_s15, %s859_s17 }
   0x8   : > { %p67_p5 = scmp.eq.s32.totalorder %s65_s19, 0  ;;  %p761_p6 = por %p134_p4, %p76_p1 }
   0x9   : > { %p582_p7 = scmp.ge.s32.totalorder %s702_s16, 3 }
   0xa   : > { %s766_s22 = scalar_select %p67_p5, %s690_s13, %s69_s20  }
   0xb   : > { %168 = sbr.rel (%p582_p7) target bundleno = 30 (0x1e), region = 20 }
  0x12   : > { %171 = sbr.rel (!%p78_p3) target bundleno = 30 (0x1e), region = 24  ;;  %s173_s23 = sand.u32 (%p78_p3), 1, %s690_s13  }
  0x13   : > { %s584_s24 = sshll.u32 (%p78_p3), %s698_s15, 3  ;;  %s583_s25 = sshll.u32 (%p78_p3), %s173_s23, 7 }
  0x14   : > { %s774_s28 = scalar_lea.vmem (%p78_p3), %s850_s1, %s584_s24  ;;  %s175_s29 = scalar_lea.vmem (%p78_p3), [#allocation3], %s583_s25 }
  0x15   : > { %v238_v0 = vld [vmem:[%s774_s28] sm:$0xff] (%p78_p3)  ;;  %v240_v1 = vld [vmem:[%s774_s28 + $0x18] sm:$0xff] (%p78_p3)  ;;  %v242_v2 = vld [vmem:[%s774_s28 + $0x30] sm:$0xff] (%p78_p3) }
  0x16   : > { %239 = vst [vmem:[%s175_s29] sm:$0xff] (%p78_p3), %v238_v0  ;;  %241 = vst [vmem:[%s175_s29 + $0x8] sm:$0xff] (%p78_p3), %v240_v1  ;;  %v244_v3 = vld [vmem:[%s774_s28 + $0x48] sm:$0xff] (%p78_p3)  ;;  %v246_v4 = vld [vmem:[%s774_s28 + $0x60] sm:$0xff] (%p78_p3) }
  0x17   : > { %243 = vst [vmem:[%s175_s29 + $0x10] sm:$0xff] (%p78_p3), %v242_v2  ;;  %v248_v5 = vld [vmem:[%s774_s28 + $0x78] sm:$0xff] (%p78_p3)  ;;  %245 = vst [vmem:[%s175_s29 + $0x18] sm:$0xff] (%p78_p3), %v244_v3  ;;  %v250_v6 = vld [vmem:[%s774_s28 + $0x90] sm:$0xff] (%p78_p3) }
  0x18   : > { %247 = vst [vmem:[%s175_s29 + $0x20] sm:$0xff] (%p78_p3), %v246_v4  ;;  %249 = vst [vmem:[%s175_s29 + $0x28] sm:$0xff] (%p78_p3), %v248_v5  ;;  %v252_v7 = vld [vmem:[%s774_s28 + $0xa8] sm:$0xff] (%p78_p3)  ;;  %v254_v8 = vld [vmem:[%s774_s28 + $0xc0] sm:$0xff] (%p78_p3) }
  0x19   : > { %251 = vst [vmem:[%s175_s29 + $0x30] sm:$0xff] %v250_v6  ;;  %253 = vst [vmem:[%s175_s29 + $0x38] sm:$0xff] %v252_v7  ;;  %v256_v9 = vld [vmem:[%s774_s28 + $0xd8] sm:$0xff]  ;;  %v258_v10 = vld [vmem:[%s774_s28 + $0xf0] sm:$0xff] }
  0x1a   : > { %255 = vst [vmem:[%s175_s29 + $0x40] sm:$0xff] %v254_v8  ;;  %v260_v11 = vld [vmem:[%s774_s28 + $0x108] sm:$0xff]  ;;  %257 = vst [vmem:[%s175_s29 + $0x48] sm:$0xff] %v256_v9  ;;  %v262_v12 = vld [vmem:[%s774_s28 + $0x120] sm:$0xff] }
  0x1b   : > { %259 = vst [vmem:[%s175_s29 + $0x50] sm:$0xff] %v258_v10  ;;  %261 = vst [vmem:[%s175_s29 + $0x58] sm:$0xff] %v260_v11  ;;  %v264_v13 = vld [vmem:[%s774_s28 + $0x138] sm:$0xff]  ;;  %v266_v14 = vld [vmem:[%s774_s28 + $0x150] sm:$0xff] }
  0x1c   : > { %263 = vst [vmem:[%s175_s29 + $0x60] sm:$0xff] %v262_v12  ;;  %265 = vst [vmem:[%s175_s29 + $0x68] sm:$0xff] %v264_v13  ;;  %v268_v15 = vld [vmem:[%s774_s28 + $0x168] sm:$0xff] }
  0x1d   : > { %267 = vst [vmem:[%s175_s29 + $0x70] sm:$0xff] %v266_v14  ;;  %269 = vst [vmem:[%s175_s29 + $0x78] sm:$0xff] %v268_v15 }
  0x1e PF: > { %p585_p8 = scmp.ge.s32.totalorder %s702_s16, 1  ;;  %p280_p9 = scmp.lt.s32.totalorder %s702_s16, 4 }
  0x20   : > { %p281_p10 = pnand %p585_p8, %p280_p9 }
  0x21   : > { %s287_s30 = sand.u32 (!%p281_p10), 1, %s686_s12   ;;  %v704_v16 = vmov (!%p281_p10), 0.0   ;;  %vm705_vm0 = vmmov (!%p281_p10), 0   ;;  %v343_v41 = vld [vmem:[%s849_s0] sm:$0xff] (!%p281_p10)  ;;  %v344_v42 = vld [vmem:[%s849_s0 + $0x8] sm:$0xff] (!%p281_p10)  ;;  %p330_p11 = scmp.lt.s32.totalorder (!%p281_p10), %s694_s14, 2 }
  0x22   : > { %284 = sbr.rel (%p281_p10) target bundleno = 295 (0x127), region = 66  ;;  %602 = vmatprep.subr.bf16.mxu0 (!%p281_p10), %v704_v16  ;;  %s586_s4 = sshll.u32 (!%p281_p10), %s287_s30, 7  ;;  %618 = vmatprep.mubr.msk.bf16.mxu0 (!%p281_p10), %vm705_vm0, %v704_v16  ;;  %v345_v43 = vpack.c.bf16 (!%p281_p10), %v344_v42, %v343_v41 }
  0x23   : > { %s797_s5 = scalar_lea.vmem (!%p281_p10), [#allocation3], %s586_s4  ;;  %s587_s20 = sshll.u32 (!%p281_p10), %s287_s30, 4 }
  0x24   : > { %v346_v17 = vld [vmem:[%s797_s5] sm:$0xff] (!%p281_p10)  ;;  %v347_v18 = vld [vmem:[%s797_s5 + $0x8] sm:$0xff] (!%p281_p10)  ;;  %v348_v19 = vld [vmem:[%s797_s5 + $0x10] sm:$0xff] (!%p281_p10)  ;;  %s319_s23 = scalar_lea.vmem (!%p281_p10), [#allocation4], %s587_s20 }
  0x25   : > { %v362_v20 = vpack.c.bf16 (!%p281_p10), %v347_v18, %v346_v17  ;;  %v349_v21 = vld [vmem:[%s797_s5 + $0x18] sm:$0xff] (!%p281_p10)  ;;  %v350_v23 = vld [vmem:[%s797_s5 + $0x20] sm:$0xff] (!%p281_p10)  ;;  %v351_v24 = vld [vmem:[%s797_s5 + $0x28] sm:$0xff] (!%p281_p10) }
  0x26   : > { %v363_v22 = vpack.c.bf16 (!%p281_p10), %v349_v21, %v348_v19  ;;  %v364_v25 = vpack.c.bf16 (!%p281_p10), %v351_v24, %v350_v23  ;;  %v352_v26 = vld [vmem:[%s797_s5 + $0x30] sm:$0xff] (!%p281_p10)  ;;  %v353_v27 = vld [vmem:[%s797_s5 + $0x38] sm:$0xff] (!%p281_p10)  ;;  %v354_v29 = vld [vmem:[%s797_s5 + $0x40] sm:$0xff] (!%p281_p10) }
  0x27   : > { %603 = vmatpush3.bf16.msra.mxu0 (!%p281_p10), %v362_v20  ;;  %v365_v28 = vpack.c.bf16 (!%p281_p10), %v353_v27, %v352_v26  ;;  %v355_v30 = vld [vmem:[%s797_s5 + $0x48] sm:$0xff] (!%p281_p10)  ;;  %v356_v32 = vld [vmem:[%s797_s5 + $0x50] sm:$0xff] (!%p281_p10)  ;;  %v357_v33 = vld [vmem:[%s797_s5 + $0x58] sm:$0xff] (!%p281_p10) }
  0x28   : > { %604 = vmatprep.subr.bf16.mxu0 (!%p281_p10), %v704_v16  ;;  %v366_v31 = vpack.c.bf16 (!%p281_p10), %v355_v30, %v354_v29  ;;  %v367_v34 = vpack.c.bf16 (!%p281_p10), %v357_v33, %v356_v32  ;;  %v358_v35 = vld [vmem:[%s797_s5 + $0x60] sm:$0xff] (!%p281_p10)  ;;  %v359_v36 = vld [vmem:[%s797_s5 + $0x68] sm:$0xff] (!%p281_p10)  ;;  %v360_v38 = vld [vmem:[%s797_s5 + $0x70] sm:$0xff] (!%p281_p10) }
  0x29   : > { %v368_v37 = vpack.c.bf16 %v359_v36, %v358_v35  ;;  %v361_v39 = vld [vmem:[%s797_s5 + $0x78] sm:$0xff]  ;;  %s331_s10 = scalar_select %p330_p11, %s694_s14, 2 }
  0x2a   : > { %v369_v40 = vpack.c.bf16 %v361_v39, %v360_v38  ;;  %s590_s24 = sshll.u32 (%p761_p6), %s694_s14, 3 }
  0x2b   : > { %605 = vmatpush3.bf16.msra.mxu0 %v363_v22  ;;  %s332_s19 = scalar_lea.vmem %s851_s2, %s331_s10  ;;  %s442_s26 = scalar_lea.vmem (%p761_p6), %s852_s3, %s590_s24 }
  0x2c   : > { %606 = vmatprep.subr.bf16.mxu0 %v704_v16  ;;  %v588_v44 = vld [vmem:[%s332_s19] ss:$0 sm:$0xff] }
  0x2f   : > { %607 = vmatpush3.bf16.msra.mxu0 %v364_v25 }
  0x30   : > { %608 = vmatprep.subr.bf16.mxu0 %v704_v16 }
  0x33   : > { %609 = vmatpush3.bf16.msra.mxu0 %v365_v28 }
  0x34   : > { %610 = vmatprep.subr.bf16.mxu0 %v704_v16 }
  0x37   : > { %611 = vmatpush3.bf16.msra.mxu0 %v366_v31 }
  0x38   : > { %612 = vmatprep.subr.bf16.mxu0 %v704_v16 }
  0x3b   : > { %613 = vmatpush3.bf16.msra.mxu0 %v367_v34 }
  0x3c   : > { %614 = vmatprep.subr.bf16.mxu0 %v704_v16 }
  0x3f   : > { %615 = vmatpush3.bf16.msra.mxu0 %v368_v37 }
  0x40   : > { %616 = vmatprep.subr.bf16.mxu0 %v704_v16 }
  0x43   : > { %617 = vmatpush3.bf16.msra.mxu0 %v369_v40 }
  0x46   : > { %619 = vmatmul.mubr.bf16.vlgmr.msra.gmra.mrb[0].mxu0 %v345_v43 }
 0x118   : > { %437 = sbr.rel (!%p761_p6) target bundleno = 295 (0x127), region = 82 }
 0x119   : > { %v404_v45 = vpop.f32.mrb[0].mxu0 }
 0x11a   : > { %v427_v46 = vadd.f32 %v588_v44, %v404_v45  ;;  %v620_v47 = vpop.f32.mrb[1].mxu0 }
 0x11b   : > { %v407_v48 = vpop.f32.mrb[2].mxu0 }
 0x11c   : > { %429 = vst [vmem:[%s319_s23] sm:$0xff] %v427_v46  ;;  %v428_v49 = vadd.f32 %v588_v44, %v407_v48  ;;  %v621_v50 = vpop.f32.mrb[3].mxu0 }
 0x11e   : > { %430 = vst [vmem:[%s319_s23 + $0x8] sm:$0xff] %v428_v49 }
 0x123   : > { %v472_v51 = vld [vmem:[%s319_s23] sm:$0xff] }
 0x124   : > { %473 = vst [vmem:[%s442_s26] sm:$0xff] %v472_v51 }
 0x125   : > { %v474_v52 = vld [vmem:[%s319_s23 + $0x8] sm:$0xff] }
 0x126   : > { %475 = vst [vmem:[%s442_s26 + $0x18] sm:$0xff] %v474_v52 }
 0x127 PF: > { %s13_s16 = sadd.s32 1, %s702_s16   ;;  %s854_s12 = smov %s690_s13 }
 0x128   : > { %p10_p12 = scmp.ge.s32.totalorder %s13_s16, 5   ;;  %s855_s13 = smov %s766_s22 }
 0x129   : > { %s856_s14 = smov %s698_s15  ;;  %s857_s15 = smov %s859_s17 }
 0x12a   :  { %12 = sbr.rel (!%p10_p12) target bundleno = 3 (0x3), region = 157 }

// kernel: _lambda_.29
= control target key start
LH: loop header
LB: loop body
LE: loop exit
PB: predicated region body
PF: predicated region fallthrough
CT: control target
= control target key end

     0   :  { %s853_s15 = smov 0   ;;  %s855_s16 = smov 0   ;;  %s931_s0 = inlined_call_operand.vmem [shape: f32[2,1,8], index: 0, kind: input, shape index: {}]   ;;  %s932_s1 = inlined_call_operand.vmem [shape: f32[2,2,8,64], index: 1, kind: input, shape index: {}]   ;;  %s933_s2 = inlined_call_operand.vmem [shape: f32[2,2,8,64], index: 2, kind: input, shape index: {}]   ;;  %s934_s3 = inlined_call_operand.vmem [shape: f32[2,2,8,64], index: 3, kind: input, shape index: {}]   ;;  %s935_s4 = inlined_call_operand.vmem [shape: f32[2,2,8,64], index: 4, kind: output, shape index: {}]  }
   0x1   :  { %s857_s17 = smov 0   ;;  %s859_s18 = smov 0  }
   0x2   :  { %s861_s19 = smov 0  }
   0x3 LB: > { %s36_s20 = sadd.s32 1, %s814_s17  ;;  %s40_s21 = sadd.s32 1, %s818_s18  ;;  %s822_s19 = sphi %s861_s19, %s14_s19   ;;  %s818_s18 = sphi %s859_s18, %s939_s18   ;;  %s814_s17 = sphi %s857_s17, %s938_s17   ;;  %s810_s16 = sphi %s855_s16, %s937_s16   ;;  %s806_s15 = sphi %s853_s15, %s936_s15  }
   0x4   : > { %p38_p0 = scmp.ge.s32.totalorder %s36_s20, 2  ;;  %p702_p1 = scmp.ge.s32.totalorder %s822_s19, 1 }
   0x5   : > { %p255_p2 = scmp.lt.s32.totalorder %s822_s19, 5 }
   0x6   : > { %s941_s20 = smov (%p38_p0, %s36_s20), 0  ;;  %s943_s21 = smov (!%p38_p0, %s40_s21), %s818_s18 }
   0x7   : > { %p256_p3 = pnand %p702_p1, %p255_p2  ;;  %p42_p4 = scmp.ge.s32.totalorder %s943_s21, 2 }
   0x8   : > { %p321_p5 = scmp.lt.s32.totalorder (!%p256_p3), %s810_s16, 1  ;;  %p329_p6 = scmp.lt.s32.totalorder (!%p256_p3), %s806_s15, 1  ;;  %vm379_vm0 = vcmask (!%p256_p3), 523264   ;;  %v824_v0 = vmov (!%p256_p3), 0.0   ;;  %vm825_vm1 = vmmov (!%p256_p3), 0   ;;  %vm376_vm2 = vcmask (!%p256_p3), 7168  }
   0x9   : > { %s945_s21 = smov (%p42_p4, %s943_s21), 0  ;;  %259 = sbr.rel (%p256_p3) target bundleno = 831 (0x33f), region = 36 }
   0xa   : > { %720 = vmatprep.subr.bf16.mxu0 (!%p256_p3), %v824_v0  ;;  %380 = vst.msk [vmem:[#allocation4] sm:$0xff] (!%p256_p3), %vm379_vm0, %v824_v0  ;;  %722 = vmatprep.mubr.msk.bf16.mxu0 (!%p256_p3), %vm825_vm1, %v824_v0  ;;  %v826_v6 = vmov (!%p256_p3), -inf   ;;  %vm444_vm3 = vcmask (!%p256_p3), 64512   ;;  %v827_v15 = vmov (!%p256_p3), 0   ;;  %vm479_vm4 = vcmask (!%p256_p3), 1043456  }
   0xb   : > { %726 = vmatprep.subr.bf16.mxu1 (!%p256_p3), %v824_v0  ;;  %728 = vmatprep.mubr.msk.bf16.mxu1 (!%p256_p3), %vm825_vm1, %v824_v0  ;;  %377 = vst.msk [vmem:[#allocation2] sm:$0xff] (!%p256_p3), %vm376_vm2, %v826_v6  ;;  %378 = vst.msk [vmem:[#allocation3] sm:$0xff] (!%p256_p3), %vm376_vm2, %v824_v0 }
   0xc   : > { %776 = vset.pattern.permute.xlu0 (!%p256_p3), %v827_v15  ;;  %777 = vset.pattern.permute.xlu1 (!%p256_p3), %v827_v15 }
  0x10   : > { %s947_s16 = smov (!%p321_p5, %s810_s16), 1  ;;  %s949_s15 = smov (!%p329_p6, %s806_s15), 1 }
  0x11   : > { %s703_s22 = sshll.u32 %s947_s16, 1  ;;  %s326_s7 = scalar_lea.vmem %s931_s0, %s947_s16  ;;  %v468_v37 = vld [vmem:[#allocation4] sm:$0xff] }
  0x12   : > { %s335_s23 = sadd.s32 %s703_s22, %s949_s15  ;;  %v712_v8 = vld [vmem:[%s326_s7] ss:$0 sm:$0xff]  ;;  %v460_v31 = vld [vmem:[#allocation3] sm:$0xff] }
  0x13   : > { %s884_s24 = sshll.u32 %s335_s23, 3  ;;  %v443_v16 = vld [vmem:[#allocation2] sm:$0xff] }
  0x14   : > { %s348_s27 = scalar_lea.vmem %s933_s2, %s884_s24  ;;  %s337_s30 = scalar_lea.vmem %s932_s1, %s884_s24 }
  0x15   : > { %v383_v1 = vld [vmem:[%s348_s27] sm:$0xff]  ;;  %s359_s10 = scalar_lea.vmem %s934_s3, %s884_s24  ;;  %s370_s13 = scalar_lea.vmem %s935_s4, %s884_s24 }
  0x16   : > { %v384_v2 = vpack.c.bf16 %v383_v1, %v383_v1  ;;  %v381_v4 = vld [vmem:[%s337_s30] sm:$0xff] }
  0x17   : > { %v382_v5 = vpack.c.bf16 %v381_v4, %v381_v4  ;;  %v385_v20 = vld [vmem:[%s359_s10] sm:$0xff] }
  0x18   : > { %v393_v3 = vsel %vm379_vm0, %v384_v2, 0  ;;  %v386_v21 = vpack.c.bf16 %v385_v20, %v385_v20 }
  0x19   : > { %721 = vmatpush3.bf16.xpose.msra.mxu0 %v393_v3 }
  0x1a   : > { %v481_v22 = vsel %vm479_vm4, %v386_v21, 0 }
  0x1b   : > { %727 = vmatpush3.bf16.msra.mxu1 %v481_v22 }
  0x20   : > { %723 = vmatmul.mubr.msk.bf16.vlgmr.msra.gmra.mrb[0].mxu0 %vm379_vm0, %v382_v5 }
  0xf3   : > { %v429_v7 = vpop.f32.mrb[0].mxu0 }
  0xf4   : > { %v435_v9 = vmul.f32 0.125, %v429_v7  ;;  %v724_v10 = vpop.f32.mrb[1].mxu0 }
  0xf5   : > { %v432_v11 = vpop.f32.mrb[2].mxu0 }
  0xf6   : > { %v725_v12 = vpop.f32.mrb[3].mxu0  ;;  %v442_v13 = vadd.f32 %v712_v8, %v435_v9 }
  0xf8   : > { %v445_v14 = vsel %vm444_vm3, %v442_v13, -inf }
  0xf9   : > { %446 = vmax.xlane.f32.xlu0 %v445_v14 }
 0x186   : > { %v447_v17 = vpop.xlane.xlu0 %446 }
 0x187   : > { %v448_v18 = vmax.f32 %v443_v16, %v447_v17 }
 0x189   : > { %v449_v19 = vsub.f32 %v443_v16, %v448_v18  ;;  %525 = vst.msk [vmem:[#allocation2] sm:$0xff] %vm376_vm2, %v448_v18  ;;  %454 = vperm.xlu0 %776, %v448_v18  }
 0x18b   : > { %v450_v29 = vmul.f32 1.442695, %v449_v19 }
 0x208   : > { %v455_v23 = vpop.permute.xlu0 %454 }
 0x209   : > { %v457_v24 = vsub.f32 %v442_v13, %v455_v23 }
 0x20b   : > { %v458_v25 = vmul.f32 1.442695, %v457_v24 }
 0x20d   : > { %778 = vpow2.f32 %v458_v25 }
 0x20e   : > { %780 = vpow2.f32 %v450_v29 }
 0x217   : > { %v779_v26 = vpop.eup %778 }
 0x218   : > { %v462_v27 = vsel %vm444_vm3, %v779_v26, 0.0  ;;  %v475_v28 = vpack.c.bf16 %v779_v26, %v779_v26  ;;  %v781_v30 = vpop.eup %780 }
 0x219   : > { %463 = vadd.xlane.f32.xlu1 %v462_v27  ;;  %v461_v32 = vmul.f32 %v781_v30, %v460_v31 }
 0x21a   : > { %729 = vmatmul.mubr.msk.bf16.vlgmr.msra.gmra.mrb[0].mxu1 %vm444_vm3, %v475_v28 }
 0x22a   : > { %471 = vperm.xlu1 %777, %v781_v30  }
 0x2a6   : > { %v464_v33 = vpop.xlane.xlu1 %463 }
 0x2a7   : > { %v465_v34 = vadd.f32 %v464_v33, %v461_v32 }
 0x2a9   : > { %467 = vst.msk [vmem:[#allocation3] sm:$0xff] %vm376_vm2, %v465_v34 }
 0x2aa   : > { %v472_v38 = vpop.permute.xlu1 %471 }
 0x2ab   : > { %v474_v39 = vmul.f32 %v472_v38, %v468_v37 }
 0x2b0   : > { %v530_v35 = vld [vmem:[#allocation3] sm:$0xff] }
 0x2b1   : > { %782 = vrcp.f32 %v530_v35 }
 0x2bb   : > { %v783_v36 = vpop.eup %782 }
 0x2bc   : > { %534 = vperm.xlu1 %777, %v783_v36  }
 0x2ed   : > { %v517_v40 = vpop.f32.mrb[0].mxu1 }
 0x2ee   : > { %v523_v41 = vadd.f32 %v517_v40, %v474_v39  ;;  %v730_v42 = vpop.f32.mrb[1].mxu1 }
 0x2ef   : > { %v520_v43 = vpop.f32.mrb[2].mxu1 }
 0x2f0   : > { %524 = vst.msk [vmem:[#allocation4] sm:$0xff] %vm379_vm0, %v523_v41  ;;  %v731_v44 = vpop.f32.mrb[3].mxu1 }
 0x2f7   : > { %v529_v45 = vld [vmem:[#allocation4] sm:$0xff] }
 0x33b   : > { %v535_v46 = vpop.permute.xlu1 %534 }
 0x33c   : > { %v537_v47 = vmul.f32 %v535_v46, %v529_v45 }
 0x33e   : > { %538 = vst.msk [vmem:[%s370_s13] sm:$0xff] %vm379_vm0, %v537_v47 }
 0x33f PF: > { %s14_s19 = sadd.s32 1, %s822_s19   ;;  %s936_s15 = smov %s814_s17 }
 0x340   : > { %p11_p7 = scmp.ge.s32.totalorder %s14_s19, 6   ;;  %s937_s16 = smov %s818_s18 }
 0x341   : > { %s938_s17 = smov %s941_s20  ;;  %s939_s18 = smov %s945_s21 }
 0x342   :  { %13 = sbr.rel (!%p11_p7) target bundleno = 3 (0x3), region = 83 }

// kernel: _lambda_.31
= control target key start
LH: loop header
LB: loop body
LE: loop exit
PB: predicated region body
PF: predicated region fallthrough
CT: control target
= control target key end

     0   :  { %s125_s0 = inlined_call_operand.vmem [shape: f32[16,128], index: 0, kind: input, shape index: {}]   ;;  %s126_s1 = inlined_call_operand.vmem [shape: f32[16,128], index: 1, kind: input, shape index: {}]   ;;  %s127_s2 = inlined_call_operand.vmem [shape: f32[1,128], index: 2, kind: input, shape index: {}]   ;;  %s128_s3 = inlined_call_operand.vmem [shape: f32[1,128], index: 3, kind: input, shape index: {}]   ;;  %s129_s4 = inlined_call_operand.vmem [shape: f32[16,128], index: 4, kind: output, shape index: {}]  }
   0x1   :  { %v17_v0 = vld [vmem:[%s125_s0] sm:$0xff]  ;;  %v18_v2 = vld [vmem:[%s125_s0 + $0x8] sm:$0xff] }
   0x2   :  { %v19_v1 = vld [vmem:[%s126_s1] sm:$0xff]  ;;  %v20_v4 = vld [vmem:[%s126_s1 + $0x8] sm:$0xff] }
   0x3   :  { %v21_v3 = vadd.f32 %v19_v1, %v17_v0  ;;  %v22_v5 = vadd.f32 %v20_v4, %v18_v2  ;;  %v70_v21 = vld [vmem:[%s127_s2] ss:$0 sm:$0xff] }
   0x4   :  { %v71_v23 = vld [vmem:[%s128_s3] ss:$0 sm:$0xff] }
   0x5   :  { %23 = vadd.xlane.f32.xlu0 %v21_v3 }
   0x9   :  { %25 = vadd.xlane.f32.xlu0 %v22_v5 }
  0x92   :  { %v24_v6 = vpop.xlane.xlu0 %23 }
  0x93   :  { %v28_v7 = vmul.f32 0.0078125, %v24_v6 }
  0x95   :  { %v30_v8 = vsub.f32 %v21_v3, %v28_v7 }
  0x96   :  { %v26_v9 = vpop.xlane.xlu0 %25 }
  0x97   :  { %v29_v10 = vmul.f32 0.0078125, %v26_v9  ;;  %v32_v11 = vmul.f32 %v30_v8, %v30_v8 }
  0x99   :  { %v31_v12 = vsub.f32 %v22_v5, %v29_v10  ;;  %34 = vadd.xlane.f32.xlu1 %v32_v11 }
  0x9b   :  { %v33_v13 = vmul.f32 %v31_v12, %v31_v12 }
  0x9d   :  { %36 = vadd.xlane.f32.xlu1 %v33_v13 }
 0x126   :  { %v35_v14 = vpop.xlane.xlu1 %34 }
 0x127   :  { %v38_v15 = vmul.f32 0.0078125, %v35_v14 }
 0x129   :  { %v40_v16 = vadd.f32 1e-12, %v38_v15 }
 0x12a   :  { %v37_v17 = vpop.xlane.xlu1 %36 }
 0x12b   :  { %72 = vrsqrt.f32 %v40_v16  ;;  %v39_v18 = vmul.f32 0.0078125, %v37_v17 }
 0x12d   :  { %v41_v19 = vadd.f32 1e-12, %v39_v18 }
 0x12f   :  { %74 = vrsqrt.f32 %v41_v19 }
 0x135   :  { %v73_v20 = vpop.eup %72 }
 0x136   :  { %v44_v22 = vmul.f32 %v73_v20, %v30_v8 }
 0x138   :  { %v53_v24 = vmul.f32 %v70_v21, %v44_v22 }
 0x139   :  { %v75_v25 = vpop.eup %74 }
 0x13a   :  { %v62_v26 = vadd.f32 %v71_v23, %v53_v24  ;;  %v45_v27 = vmul.f32 %v75_v25, %v31_v12 }
 0x13c   :  { %64 = vst [vmem:[%s129_s4] sm:$0xff] %v62_v26  ;;  %v54_v28 = vmul.f32 %v70_v21, %v45_v27 }
 0x13e   :  { %v63_v29 = vadd.f32 %v71_v23, %v54_v28 }
 0x140   :  { %65 = vst [vmem:[%s129_s4 + $0x8] sm:$0xff] %v63_v29 }

// kernel: _lambda_.30
= control target key start
LH: loop header
LB: loop body
LE: loop exit
PB: predicated region body
PF: predicated region fallthrough
CT: control target
= control target key end

     0   :  { %v147_v0 = vmov 0.0   ;;  %vm148_vm0 = vmmov 0   ;;  %s232_s1 = inlined_call_operand.vmem [shape: f32[128,128], index: 1, kind: input, shape index: {}]   ;;  %s233_s0 = inlined_call_operand.vmem [shape: f32[16,128], index: 0, kind: input, shape index: {}]   ;;  %s234_s2 = inlined_call_operand.vmem [shape: f32[1,128], index: 2, kind: input, shape index: {}]   ;;  %s235_s3 = inlined_call_operand.vmem [shape: f32[16,128], index: 3, kind: output, shape index: {}]  }
   0x1   :  { %125 = vmatprep.subr.bf16.mxu0 %v147_v0  ;;  %v26_v1 = vld [vmem:[%s232_s1] sm:$0xff]  ;;  %v27_v2 = vld [vmem:[%s232_s1 + $0x8] sm:$0xff]  ;;  %v28_v3 = vld [vmem:[%s232_s1 + $0x10] sm:$0xff]  ;;  %141 = vmatprep.mubr.msk.bf16.mxu0 %vm148_vm0, %v147_v0 }
   0x2   :  { %v42_v4 = vpack.c.bf16 %v27_v2, %v26_v1  ;;  %v29_v5 = vld [vmem:[%s232_s1 + $0x18] sm:$0xff]  ;;  %v30_v7 = vld [vmem:[%s232_s1 + $0x20] sm:$0xff]  ;;  %v31_v8 = vld [vmem:[%s232_s1 + $0x28] sm:$0xff] }
   0x3   :  { %v43_v6 = vpack.c.bf16 %v29_v5, %v28_v3  ;;  %v44_v9 = vpack.c.bf16 %v31_v8, %v30_v7  ;;  %v32_v10 = vld [vmem:[%s232_s1 + $0x30] sm:$0xff]  ;;  %v33_v11 = vld [vmem:[%s232_s1 + $0x38] sm:$0xff]  ;;  %v34_v13 = vld [vmem:[%s232_s1 + $0x40] sm:$0xff] }
   0x4   :  { %126 = vmatpush3.bf16.msra.mxu0 %v42_v4  ;;  %v45_v12 = vpack.c.bf16 %v33_v11, %v32_v10  ;;  %v35_v14 = vld [vmem:[%s232_s1 + $0x48] sm:$0xff]  ;;  %v36_v16 = vld [vmem:[%s232_s1 + $0x50] sm:$0xff]  ;;  %v37_v17 = vld [vmem:[%s232_s1 + $0x58] sm:$0xff] }
   0x5   :  { %127 = vmatprep.subr.bf16.mxu0 %v147_v0  ;;  %v46_v15 = vpack.c.bf16 %v35_v14, %v34_v13  ;;  %v47_v18 = vpack.c.bf16 %v37_v17, %v36_v16  ;;  %v38_v19 = vld [vmem:[%s232_s1 + $0x60] sm:$0xff]  ;;  %v39_v20 = vld [vmem:[%s232_s1 + $0x68] sm:$0xff]  ;;  %v40_v22 = vld [vmem:[%s232_s1 + $0x70] sm:$0xff] }
   0x6   :  { %v48_v21 = vpack.c.bf16 %v39_v20, %v38_v19  ;;  %v41_v23 = vld [vmem:[%s232_s1 + $0x78] sm:$0xff]  ;;  %v23_v25 = vld [vmem:[%s233_s0] sm:$0xff]  ;;  %v24_v26 = vld [vmem:[%s233_s0 + $0x8] sm:$0xff] }
   0x7   :  { %v49_v24 = vpack.c.bf16 %v41_v23, %v40_v22  ;;  %v25_v27 = vpack.c.bf16 %v24_v26, %v23_v25  ;;  %v115_v28 = vld [vmem:[%s234_s2] ss:$0 sm:$0xff] }
   0x8   :  { %128 = vmatpush3.bf16.msra.mxu0 %v43_v6 }
   0x9   :  { %129 = vmatprep.subr.bf16.mxu0 %v147_v0 }
   0xc   :  { %130 = vmatpush3.bf16.msra.mxu0 %v44_v9 }
   0xd   :  { %131 = vmatprep.subr.bf16.mxu0 %v147_v0 }
  0x10   :  { %132 = vmatpush3.bf16.msra.mxu0 %v45_v12 }
  0x11   :  { %133 = vmatprep.subr.bf16.mxu0 %v147_v0 }
  0x14   :  { %134 = vmatpush3.bf16.msra.mxu0 %v46_v15 }
  0x15   :  { %135 = vmatprep.subr.bf16.mxu0 %v147_v0 }
  0x18   :  { %136 = vmatpush3.bf16.msra.mxu0 %v47_v18 }
  0x19   :  { %137 = vmatprep.subr.bf16.mxu0 %v147_v0 }
  0x1c   :  { %138 = vmatpush3.bf16.msra.mxu0 %v48_v21 }
  0x1d   :  { %139 = vmatprep.subr.bf16.mxu0 %v147_v0 }
  0x20   :  { %140 = vmatpush3.bf16.msra.mxu0 %v49_v24 }
  0x23   :  { %142 = vmatmul.mubr.bf16.vlgmr.msra.gmra.mrb[0].mxu0 %v25_v27 }
  0xf6   :  { %v84_v29 = vpop.f32.mrb[0].mxu0 }
  0xf7   :  { %v107_v30 = vadd.f32 %v115_v28, %v84_v29  ;;  %v143_v31 = vpop.f32.mrb[1].mxu0 }
  0xf8   :  { %v87_v32 = vpop.f32.mrb[2].mxu0 }
  0xf9   :  { %109 = vst [vmem:[%s235_s3] sm:$0xff] %v107_v30  ;;  %v108_v33 = vadd.f32 %v115_v28, %v87_v32  ;;  %v144_v34 = vpop.f32.mrb[3].mxu0 }
  0xfb   :  { %110 = vst [vmem:[%s235_s3 + $0x8] sm:$0xff] %v108_v33 }

// kernel: _lambda_.32
= control target key start
LH: loop header
LB: loop body
LE: loop exit
PB: predicated region body
PF: predicated region fallthrough
CT: control target
= control target key end

     0   :  { %s773_s12 = smov 0   ;;  %s775_s13 = smov 0   ;;  %s961_s0 = inlined_call_operand.vmem [shape: f32[16,128], index: 0, kind: input, shape index: {}]   ;;  %s962_s1 = inlined_call_operand.vmem [shape: f32[128,512], index: 1, kind: input, shape index: {}]   ;;  %s963_s2 = inlined_call_operand.vmem [shape: f32[1,512], index: 2, kind: input, shape index: {}]   ;;  %s964_s3 = inlined_call_operand.vmem [shape: f32[16,512], index: 3, kind: output, shape index: {}]  }
   0x1   :  { %s777_s14 = smov 0   ;;  %s779_s15 = smov 0  }
   0x2   :  { %s781_s16 = smov 0  }
   0x3 LB: > { %s28_s17 = sadd.s32 1, %s746_s15  ;;  %s644_s18 = sadd.s32 4294967295, %s750_s16   ;;  %s750_s16 = sphi %s781_s16, %s13_s16   ;;  %s746_s15 = sphi %s779_s15, %s969_s15   ;;  %s742_s14 = sphi %s777_s14, %s968_s14   ;;  %s738_s13 = sphi %s775_s13, %s967_s13   ;;  %s734_s12 = sphi %s773_s12, %s966_s12  }
   0x4   : > { %p30_p0 = scmp.ge.s32.totalorder %s28_s17, 2  ;;  %p76_p1 = scmp.ne.s32.totalorder %s738_s13, %s734_s12 }
   0x5   : > { %p77_p2 = scmp.eq.s32.totalorder %s750_s16, 0  ;;  %p134_p4 = scmp.eq.s32.totalorder %s644_s18, 1 }
   0x6   : > { %s971_s17 = smov (%p30_p0, %s28_s17), 0  ;;  %s69_s20 = sadd.s32 1, %s738_s13 }
   0x7   : > { %p78_p3 = por %p77_p2, %p76_p1  ;;  %s65_s19 = ssub.s32 %s746_s15, %s971_s17 }
   0x8   : > { %p67_p5 = scmp.eq.s32.totalorder %s65_s19, 0  ;;  %p808_p6 = por %p134_p4, %p76_p1 }
   0x9   : > { %p648_p7 = scmp.ge.s32.totalorder %s750_s16, 2 }
   0xa   : > { %s813_s22 = scalar_select %p67_p5, %s738_s13, %s69_s20  }
   0xb   : > { %168 = sbr.rel (%p648_p7) target bundleno = 38 (0x26), region = 20 }
  0x12   : > { %171 = sbr.rel (!%p78_p3) target bundleno = 38 (0x26), region = 24  ;;  %s173_s23 = sand.u32 (%p78_p3), 1, %s738_s13  }
  0x13   : > { %s661_s24 = sshll.u32 (%p78_p3), %s746_s15, 4  ;;  %s649_s25 = sshll.u32 (%p78_p3), %s173_s23, 8 }
  0x14   : > { %s821_s28 = scalar_lea.vmem (%p78_p3), %s962_s1, %s661_s24  ;;  %s826_s29 = scalar_lea.vmem (%p78_p3), [#allocation3], %s649_s25 }
  0x15   : > { %v194_v0 = vld [vmem:[%s821_s28] sm:$0xff] (%p78_p3)  ;;  %v196_v1 = vld [vmem:[%s821_s28 + $0x8] sm:$0xff] (%p78_p3) }
  0x16   : > { %v198_v2 = vld [vmem:[%s821_s28 + $0x20] sm:$0xff] (%p78_p3)  ;;  %195 = vst [vmem:[%s826_s29] sm:$0xff] (%p78_p3), %v194_v0  ;;  %197 = vst [vmem:[%s826_s29 + $0x8] sm:$0xff] (%p78_p3), %v196_v1  ;;  %v200_v3 = vld [vmem:[%s821_s28 + $0x28] sm:$0xff] (%p78_p3) }
  0x17   : > { %199 = vst [vmem:[%s826_s29 + $0x10] sm:$0xff] (%p78_p3), %v198_v2  ;;  %v202_v4 = vld [vmem:[%s821_s28 + $0x40] sm:$0xff] (%p78_p3)  ;;  %v204_v5 = vld [vmem:[%s821_s28 + $0x48] sm:$0xff] (%p78_p3)  ;;  %201 = vst [vmem:[%s826_s29 + $0x18] sm:$0xff] (%p78_p3), %v200_v3 }
  0x18   : > { %203 = vst [vmem:[%s826_s29 + $0x20] sm:$0xff] (%p78_p3), %v202_v4  ;;  %205 = vst [vmem:[%s826_s29 + $0x28] sm:$0xff] (%p78_p3), %v204_v5  ;;  %v206_v6 = vld [vmem:[%s821_s28 + $0x60] sm:$0xff] (%p78_p3)  ;;  %v208_v7 = vld [vmem:[%s821_s28 + $0x68] sm:$0xff] (%p78_p3) }
  0x19   : > { %v210_v8 = vld [vmem:[%s821_s28 + $0x80] sm:$0xff]  ;;  %207 = vst [vmem:[%s826_s29 + $0x30] sm:$0xff] %v206_v6  ;;  %209 = vst [vmem:[%s826_s29 + $0x38] sm:$0xff] %v208_v7  ;;  %v212_v9 = vld [vmem:[%s821_s28 + $0x88] sm:$0xff] }
  0x1a   : > { %211 = vst [vmem:[%s826_s29 + $0x40] sm:$0xff] %v210_v8  ;;  %v214_v10 = vld [vmem:[%s821_s28 + $0xa0] sm:$0xff]  ;;  %v216_v11 = vld [vmem:[%s821_s28 + $0xa8] sm:$0xff]  ;;  %213 = vst [vmem:[%s826_s29 + $0x48] sm:$0xff] %v212_v9 }
  0x1b   : > { %215 = vst [vmem:[%s826_s29 + $0x50] sm:$0xff] %v214_v10  ;;  %217 = vst [vmem:[%s826_s29 + $0x58] sm:$0xff] %v216_v11  ;;  %v218_v12 = vld [vmem:[%s821_s28 + $0xc0] sm:$0xff]  ;;  %v220_v13 = vld [vmem:[%s821_s28 + $0xc8] sm:$0xff] }
  0x1c   : > { %v222_v14 = vld [vmem:[%s821_s28 + $0xe0] sm:$0xff]  ;;  %219 = vst [vmem:[%s826_s29 + $0x60] sm:$0xff] %v218_v12  ;;  %221 = vst [vmem:[%s826_s29 + $0x68] sm:$0xff] %v220_v13  ;;  %v224_v15 = vld [vmem:[%s821_s28 + $0xe8] sm:$0xff] }
  0x1d   : > { %223 = vst [vmem:[%s826_s29 + $0x70] sm:$0xff] %v222_v14  ;;  %v226_v16 = vld [vmem:[%s821_s28 + $0x100] sm:$0xff]  ;;  %v228_v17 = vld [vmem:[%s821_s28 + $0x108] sm:$0xff]  ;;  %225 = vst [vmem:[%s826_s29 + $0x78] sm:$0xff] %v224_v15 }
  0x1e   : > { %227 = vst [vmem:[%s826_s29 + $0x80] sm:$0xff] %v226_v16  ;;  %229 = vst [vmem:[%s826_s29 + $0x88] sm:$0xff] %v228_v17  ;;  %v230_v18 = vld [vmem:[%s821_s28 + $0x120] sm:$0xff]  ;;  %v232_v19 = vld [vmem:[%s821_s28 + $0x128] sm:$0xff] }
  0x1f   : > { %v234_v20 = vld [vmem:[%s821_s28 + $0x140] sm:$0xff]  ;;  %231 = vst [vmem:[%s826_s29 + $0x90] sm:$0xff] %v230_v18  ;;  %233 = vst [vmem:[%s826_s29 + $0x98] sm:$0xff] %v232_v19  ;;  %v236_v21 = vld [vmem:[%s821_s28 + $0x148] sm:$0xff] }
  0x20   : > { %235 = vst [vmem:[%s826_s29 + $0xa0] sm:$0xff] %v234_v20  ;;  %v238_v22 = vld [vmem:[%s821_s28 + $0x160] sm:$0xff]  ;;  %v240_v23 = vld [vmem:[%s821_s28 + $0x168] sm:$0xff]  ;;  %237 = vst [vmem:[%s826_s29 + $0xa8] sm:$0xff] %v236_v21 }
  0x21   : > { %239 = vst [vmem:[%s826_s29 + $0xb0] sm:$0xff] %v238_v22  ;;  %241 = vst [vmem:[%s826_s29 + $0xb8] sm:$0xff] %v240_v23  ;;  %v242_v24 = vld [vmem:[%s821_s28 + $0x180] sm:$0xff]  ;;  %v244_v25 = vld [vmem:[%s821_s28 + $0x188] sm:$0xff] }
  0x22   : > { %v246_v26 = vld [vmem:[%s821_s28 + $0x1a0] sm:$0xff]  ;;  %243 = vst [vmem:[%s826_s29 + $0xc0] sm:$0xff] %v242_v24  ;;  %245 = vst [vmem:[%s826_s29 + $0xc8] sm:$0xff] %v244_v25  ;;  %v248_v27 = vld [vmem:[%s821_s28 + $0x1a8] sm:$0xff] }
  0x23   : > { %247 = vst [vmem:[%s826_s29 + $0xd0] sm:$0xff] %v246_v26  ;;  %v250_v28 = vld [vmem:[%s821_s28 + $0x1c0] sm:$0xff]  ;;  %v252_v29 = vld [vmem:[%s821_s28 + $0x1c8] sm:$0xff]  ;;  %249 = vst [vmem:[%s826_s29 + $0xd8] sm:$0xff] %v248_v27 }
  0x24   : > { %251 = vst [vmem:[%s826_s29 + $0xe0] sm:$0xff] %v250_v28  ;;  %253 = vst [vmem:[%s826_s29 + $0xe8] sm:$0xff] %v252_v29  ;;  %v254_v30 = vld [vmem:[%s821_s28 + $0x1e0] sm:$0xff]  ;;  %v256_v31 = vld [vmem:[%s821_s28 + $0x1e8] sm:$0xff] }
  0x25   : > { %255 = vst [vmem:[%s826_s29 + $0xf0] sm:$0xff] %v254_v30  ;;  %257 = vst [vmem:[%s826_s29 + $0xf8] sm:$0xff] %v256_v31 }
  0x26 PF: > { %p652_p8 = scmp.ge.s32.totalorder %s750_s16, 1  ;;  %p270_p9 = scmp.lt.s32.totalorder %s750_s16, 3 }
  0x28   : > { %p271_p10 = pnand %p652_p8, %p270_p9 }
  0x29   : > { %s277_s30 = sand.u32 (!%p271_p10), 1, %s734_s12   ;;  %v752_v32 = vmov (!%p271_p10), 0   ;;  %v342_v17 = vld [vmem:[%s961_s0] sm:$0xff] (!%p271_p10)  ;;  %v343_v18 = vld [vmem:[%s961_s0 + $0x8] sm:$0xff] (!%p271_p10)  ;;  %s655_s10 = sshll.u32 (!%p271_p10), %s742_s14, 1  ;;  %v453_v20 = vlaneseq (!%p271_p10) }
  0x2a   : > { %274 = sbr.rel (%p271_p10) target bundleno = 332 (0x14c), region = 51  ;;  %s653_s4 = sshll.u32 (!%p271_p10), %s277_s30, 8  ;;  %425 = vmatprep.mubr.bf16.mxu0 (!%p271_p10), %v752_v32  ;;  %v344_v19 = vpack.c.bf16 (!%p271_p10), %v343_v18, %v342_v17 }
  0x2b   : > { %s894_s5 = scalar_lea.vmem (!%p271_p10), [#allocation3], %s653_s4  ;;  %p323_p11 = scmp.lt.s32.totalorder (!%p271_p10), %s655_s10, 3  ;;  %v454_v21 = vshrl.u32 (!%p271_p10), %v453_v20, 7 }
  0x2c   : > { %v346_v33 = vld [vmem:[%s894_s5 + $0x8] sm:$0xff] (!%p271_p10)  ;;  %v348_v34 = vld [vmem:[%s894_s5 + $0x18] sm:$0xff] (!%p271_p10)  ;;  %v345_v35 = vld [vmem:[%s894_s5] sm:$0xff] (!%p271_p10)  ;;  %s654_s20 = sshll.u32 (!%p271_p10), %s277_s30, 5 }
  0x2d   : > { %v378_v36 = vpack.c.bf16 (!%p271_p10), %v348_v34, %v346_v33  ;;  %v347_v37 = vld [vmem:[%s894_s5 + $0x10] sm:$0xff] (!%p271_p10)  ;;  %v350_v38 = vld [vmem:[%s894_s5 + $0x28] sm:$0xff] (!%p271_p10)  ;;  %v352_v39 = vld [vmem:[%s894_s5 + $0x38] sm:$0xff] (!%p271_p10)  ;;  %v455_v22 = vsub.s32 (!%p271_p10), 0, %v454_v21  ;;  %v459_v24 = vsub.s32 (!%p271_p10), 1, %v454_v21  ;;  %s310_s23 = scalar_lea.vmem (!%p271_p10), [#allocation4], %s654_s20 }
  0x2e   : > { %v377_v40 = vpack.c.bf16 (!%p271_p10), %v347_v37, %v345_v35  ;;  %v380_v41 = vpack.c.bf16 (!%p271_p10), %v352_v39, %v350_v38  ;;  %v349_v42 = vld [vmem:[%s894_s5 + $0x20] sm:$0xff] (!%p271_p10)  ;;  %v351_v43 = vld [vmem:[%s894_s5 + $0x30] sm:$0xff] (!%p271_p10)  ;;  %v354_v44 = vld [vmem:[%s894_s5 + $0x48] sm:$0xff] (!%p271_p10) }
  0x2f   : > { %393 = vmatprep.subr.bf16.mxu0 (!%p271_p10), %v378_v36  ;;  %v356_v45 = vld [vmem:[%s894_s5 + $0x58] sm:$0xff] (!%p271_p10)  ;;  %v379_v46 = vpack.c.bf16 (!%p271_p10), %v351_v43, %v349_v42  ;;  %v353_v48 = vld [vmem:[%s894_s5 + $0x40] sm:$0xff] (!%p271_p10)  ;;  %v355_v49 = vld [vmem:[%s894_s5 + $0x50] sm:$0xff] (!%p271_p10) }
  0x30   : > { %394 = vmatpush1.bf16.msra.mxu0 (!%p271_p10), %v377_v40  ;;  %v382_v47 = vpack.c.bf16 (!%p271_p10), %v356_v45, %v354_v44  ;;  %v358_v50 = vld [vmem:[%s894_s5 + $0x68] sm:$0xff] (!%p271_p10)  ;;  %v360_v51 = vld [vmem:[%s894_s5 + $0x78] sm:$0xff] (!%p271_p10)  ;;  %v381_v52 = vpack.c.bf16 (!%p271_p10), %v355_v49, %v353_v48  ;;  %v357_v54 = vld [vmem:[%s894_s5 + $0x60] sm:$0xff] (!%p271_p10) }
  0x31   : > { %395 = vmatprep.subr.bf16.mxu0 %v380_v41  ;;  %v384_v53 = vpack.c.bf16 %v360_v51, %v358_v50  ;;  %v359_v55 = vld [vmem:[%s894_s5 + $0x70] sm:$0xff]  ;;  %v362_v56 = vld [vmem:[%s894_s5 + $0x88] sm:$0xff]  ;;  %v364_v57 = vld [vmem:[%s894_s5 + $0x98] sm:$0xff]  ;;  %s973_s10 = smov (!%p323_p11, %s655_s10), 3  ;;  %s662_s12 = sshll.u32 (%p808_p6), %s742_s14, 4 }
  0x32   : > { %v383_v58 = vpack.c.bf16 %v359_v55, %v357_v54  ;;  %v386_v59 = vpack.c.bf16 %v364_v57, %v362_v56  ;;  %v361_v60 = vld [vmem:[%s894_s5 + $0x80] sm:$0xff]  ;;  %v363_v61 = vld [vmem:[%s894_s5 + $0x90] sm:$0xff]  ;;  %v366_v62 = vld [vmem:[%s894_s5 + $0xa8] sm:$0xff]  ;;  %s325_s19 = scalar_lea.vmem %s963_s2, %s973_s10  ;;  %s519_s26 = scalar_lea.vmem (%p808_p6), %s964_s3, %s662_s12 }
  0x33   : > { %v368_v63 = vld [vmem:[%s894_s5 + $0xb8] sm:$0xff]  ;;  %v385_v0 = vpack.c.bf16 %v363_v61, %v361_v60  ;;  %v365_v2 = vld [vmem:[%s894_s5 + $0xa0] sm:$0xff]  ;;  %v367_v3 = vld [vmem:[%s894_s5 + $0xb0] sm:$0xff] }
  0x34   : > { %396 = vmatpush1.bf16.msra.mxu0 %v379_v46  ;;  %v388_v1 = vpack.c.bf16 %v368_v63, %v366_v62  ;;  %v370_v4 = vld [vmem:[%s894_s5 + $0xc8] sm:$0xff]  ;;  %v372_v5 = vld [vmem:[%s894_s5 + $0xd8] sm:$0xff]  ;;  %v387_v6 = vpack.c.bf16 %v367_v3, %v365_v2  ;;  %v369_v8 = vld [vmem:[%s894_s5 + $0xc0] sm:$0xff] }
  0x35   : > { %397 = vmatprep.subr.bf16.mxu0 %v382_v47  ;;  %v390_v7 = vpack.c.bf16 %v372_v5, %v370_v4  ;;  %v371_v9 = vld [vmem:[%s894_s5 + $0xd0] sm:$0xff]  ;;  %v374_v10 = vld [vmem:[%s894_s5 + $0xe8] sm:$0xff]  ;;  %v376_v11 = vld [vmem:[%s894_s5 + $0xf8] sm:$0xff] }
  0x36   : > { %v389_v12 = vpack.c.bf16 %v371_v9, %v369_v8  ;;  %v392_v13 = vpack.c.bf16 %v376_v11, %v374_v10  ;;  %v373_v14 = vld [vmem:[%s894_s5 + $0xe0] sm:$0xff]  ;;  %v375_v15 = vld [vmem:[%s894_s5 + $0xf0] sm:$0xff] }
  0x37   : > { %v391_v16 = vpack.c.bf16 %v375_v15, %v373_v14  ;;  %v451_v23 = vld [vmem:[%s325_s19] sm:$0x3] }
  0x38   : > { %398 = vmatpush1.bf16.msra.mxu0 %v381_v52  ;;  %v456_v25 = vrot.slane %v451_v23, %v455_v22  ;;  %v460_v26 = vrot.slane %v451_v23, %v459_v24 }
  0x39   : > { %399 = vmatprep.subr.bf16.mxu0 %v384_v53 }
  0x3c   : > { %400 = vmatpush1.bf16.msra.mxu0 %v383_v58 }
  0x3d   : > { %401 = vmatprep.subr.bf16.mxu0 %v386_v59 }
  0x40   : > { %402 = vmatpush1.bf16.msra.mxu0 %v385_v0 }
  0x41   : > { %403 = vmatprep.subr.bf16.mxu0 %v388_v1 }
  0x44   : > { %404 = vmatpush1.bf16.msra.mxu0 %v387_v6 }
  0x45   : > { %405 = vmatprep.subr.bf16.mxu0 %v390_v7 }
  0x48   : > { %406 = vmatpush1.bf16.msra.mxu0 %v389_v12 }
  0x49   : > { %407 = vmatprep.subr.bf16.mxu0 %v392_v13 }
  0x4c   : > { %408 = vmatpush1.bf16.msra.mxu0 %v391_v16 }
  0x4f   : > { %426 = vmatmul.mubr.bf16.vlgmr.msra.gmra.mrb[0].mxu0 %v344_v19 }
 0x122   : > { %v427_v27 = vpop.f32.mrb[0].mxu0 }
 0x123   : > { %v463_v28 = vadd.f32 %v456_v25, %v427_v27  ;;  %v429_v29 = vpop.f32.mrb[1].mxu0 }
 0x124   : > { %v464_v30 = vadd.f32 %v460_v26, %v429_v29  ;;  %v431_v31 = vpop.f32.mrb[2].mxu0 }
 0x125   : > { %v467_v32 = vmul.f32 %v463_v28, %v463_v28  ;;  %v465_v33 = vadd.f32 %v456_v25, %v431_v31  ;;  %v433_v34 = vpop.f32.mrb[3].mxu0 }
 0x126   : > { %v468_v35 = vmul.f32 %v464_v30, %v464_v30  ;;  %v466_v36 = vadd.f32 %v460_v26, %v433_v34 }
 0x127   : > { %v471_v37 = vmul.f32 %v467_v32, %v463_v28  ;;  %v469_v38 = vmul.f32 %v465_v33, %v465_v33 }
 0x128   : > { %v472_v39 = vmul.f32 %v468_v35, %v464_v30  ;;  %v470_v40 = vmul.f32 %v466_v36, %v466_v36 }
 0x129   : > { %v475_v41 = vmul.f32 0.044715, %v471_v37  ;;  %v473_v42 = vmul.f32 %v469_v38, %v465_v33 }
 0x12a   : > { %v476_v43 = vmul.f32 0.044715, %v472_v39  ;;  %v474_v44 = vmul.f32 %v470_v40, %v466_v36 }
 0x12b   : > { %v479_v45 = vadd.f32 %v475_v41, %v463_v28  ;;  %v477_v46 = vmul.f32 0.044715, %v473_v42 }
 0x12c   : > { %v480_v47 = vadd.f32 %v476_v43, %v464_v30  ;;  %v478_v48 = vmul.f32 0.044715, %v474_v44 }
 0x12d   : > { %v483_v49 = vmul.f32 0.7978846, %v479_v45  ;;  %v481_v50 = vadd.f32 %v477_v46, %v465_v33 }
 0x12e   : > { %v484_v51 = vmul.f32 0.7978846, %v480_v47  ;;  %v482_v52 = vadd.f32 %v478_v48, %v466_v36 }
 0x12f   : > { %704 = vtanh.f32 %v483_v49  ;;  %v485_v53 = vmul.f32 0.7978846, %v481_v50 }
 0x130   : > { %706 = vtanh.f32 %v484_v51  ;;  %v486_v54 = vmul.f32 0.7978846, %v482_v52 }
 0x131   : > { %708 = vtanh.f32 %v485_v53 }
 0x132   : > { %710 = vtanh.f32 %v486_v54 }
 0x139   : > { %v705_v55 = vpop.eup %704 }
 0x13a   : > { %v707_v56 = vpop.eup %706  ;;  %v491_v57 = vadd.f32 1.0, %v705_v55 }
 0x13b   : > { %v709_v58 = vpop.eup %708  ;;  %v492_v59 = vadd.f32 1.0, %v707_v56 }
 0x13c   : > { %v711_v60 = vpop.eup %710  ;;  %v495_v61 = vmul.f32 0.5, %v491_v57  ;;  %v493_v62 = vadd.f32 1.0, %v709_v58 }
 0x13d   : > { %v496_v63 = vmul.f32 0.5, %v492_v59  ;;  %v494_v0 = vadd.f32 1.0, %v711_v60  ;;  %513 = sbr.rel (!%p808_p6) target bundleno = 332 (0x14c), region = 67 }
 0x13e   : > { %v499_v1 = vmul.f32 %v495_v61, %v463_v28  ;;  %v497_v2 = vmul.f32 0.5, %v493_v62 }
 0x13f   : > { %v500_v3 = vmul.f32 %v496_v63, %v464_v30  ;;  %v498_v4 = vmul.f32 0.5, %v494_v0 }
 0x140   : > { %503 = vst [vmem:[%s310_s23] sm:$0xff] %v499_v1  ;;  %v501_v5 = vmul.f32 %v497_v2, %v465_v33 }
 0x141   : > { %504 = vst [vmem:[%s310_s23 + $0x8] sm:$0xff] %v500_v3  ;;  %v502_v6 = vmul.f32 %v498_v4, %v466_v36 }
 0x142   : > { %505 = vst [vmem:[%s310_s23 + $0x10] sm:$0xff] %v501_v5 }
 0x143   : > { %506 = vst [vmem:[%s310_s23 + $0x18] sm:$0xff] %v502_v6 }
 0x147   : > { %v532_v7 = vld [vmem:[%s310_s23] sm:$0xff] }
 0x148   : > { %v534_v8 = vld [vmem:[%s310_s23 + $0x8] sm:$0xff]  ;;  %533 = vst [vmem:[%s519_s26] sm:$0xff] %v532_v7 }
 0x149   : > { %v536_v9 = vld [vmem:[%s310_s23 + $0x10] sm:$0xff]  ;;  %535 = vst [vmem:[%s519_s26 + $0x8] sm:$0xff] %v534_v8 }
 0x14a   : > { %v538_v10 = vld [vmem:[%s310_s23 + $0x18] sm:$0xff]  ;;  %537 = vst [vmem:[%s519_s26 + $0x20] sm:$0xff] %v536_v9 }
 0x14b   : > { %539 = vst [vmem:[%s519_s26 + $0x28] sm:$0xff] %v538_v10 }
 0x14c PF: > { %s13_s16 = sadd.s32 1, %s750_s16   ;;  %s966_s12 = smov %s738_s13 }
 0x14d   : > { %p10_p12 = scmp.ge.s32.totalorder %s13_s16, 4   ;;  %s967_s13 = smov %s813_s22 }
 0x14e   : > { %s968_s14 = smov %s746_s15  ;;  %s969_s15 = smov %s971_s17 }
 0x14f   :  { %12 = sbr.rel (!%p10_p12) target bundleno = 3 (0x3), region = 127 }

// kernel: _lambda_.49
= control target key start
LH: loop header
LB: loop body
LE: loop exit
PB: predicated region body
PF: predicated region fallthrough
CT: control target
= control target key end

     0   :  { %s464_s9 = smov 0   ;;  %s466_s10 = smov 0   ;;  %s518_s0 = inlined_call_operand.vmem [shape: f32[2,4,8], index: 0, kind: input, shape index: {}]   ;;  %s519_s1 = inlined_call_operand.vmem [shape: f32[2,2,8,128], index: 1, kind: input, shape index: {}]   ;;  %s520_s2 = inlined_call_operand.vmem [shape: f32[2,2,4,128], index: 2, kind: output, shape index: {}]  }
   0x1   :  { %s468_s11 = smov 0   ;;  %s470_s12 = smov 0  }
   0x2   :  { %s472_s13 = smov 0  }
   0x3 LB: > { %s21_s14 = sadd.s32 1, %s437_s11  ;;  %s24_s15 = sadd.s32 1, %s441_s12  ;;  %s445_s13 = sphi %s472_s13, %s12_s13   ;;  %s441_s12 = sphi %s470_s12, %s524_s12   ;;  %s437_s11 = sphi %s468_s11, %s523_s11   ;;  %s433_s10 = sphi %s466_s10, %s522_s10   ;;  %s429_s9 = sphi %s464_s9, %s521_s9  }
   0x4   : > { %p22_p0 = scmp.ge.s32.totalorder %s21_s14, 2  ;;  %p348_p1 = scmp.ge.s32.totalorder %s445_s13, 1 }
   0x5   : > { %p140_p2 = scmp.lt.s32.totalorder %s445_s13, 5 }
   0x6   : > { %s526_s14 = smov (%p22_p0, %s21_s14), 0  ;;  %s528_s15 = smov (!%p22_p0, %s24_s15), %s441_s12 }
   0x7   : > { %p141_p3 = pnand %p348_p1, %p140_p2  ;;  %p26_p4 = scmp.ge.s32.totalorder %s528_s15, 2 }
   0x8   : > { %p172_p5 = scmp.lt.s32.totalorder (!%p141_p3), %s429_s9, 1  ;;  %p176_p6 = scmp.lt.s32.totalorder (!%p141_p3), %s433_s10, 1  ;;  %v447_v0 = vmov (!%p141_p3), 0.0   ;;  %vm448_vm0 = vmmov (!%p141_p3), 0   ;;  %vm201_vm1 = vcmask (!%p141_p3), 1043456   ;;  %vm197_vm2 = vcmask (!%p141_p3), 64512  }
   0x9   : > { %s530_s15 = smov (%p26_p4, %s528_s15), 0  ;;  %144 = sbr.rel (%p141_p3) target bundleno = 243 (0xf3), region = 28 }
   0xa   : > { %359 = vmatprep.subr.bf16.mxu0 (!%p141_p3), %v447_v0  ;;  %361 = vmatprep.mubr.msk.bf16.mxu0 (!%p141_p3), %vm448_vm0, %v447_v0 }
  0x10   : > { %s532_s9 = smov (!%p172_p5, %s429_s9), 1  ;;  %s534_s10 = smov (!%p176_p6, %s433_s10), 1 }
  0x11   : > { %s349_s16 = sshll.u32 %s532_s9, 2  ;;  %s350_s17 = sshll.u32 %s534_s10, 1 }
  0x12   : > { %s181_s18 = sadd.s32 %s350_s17, %s532_s9  ;;  %s175_s21 = scalar_lea.vmem %s518_s0, %s349_s16 }
  0x13   : > { %s351_s22 = sshll.u32 %s181_s18, 3  ;;  %v193_v2 = vld [vmem:[%s175_s21] sm:$0xf]  ;;  %s353_s26 = sshll.u32 %s181_s18, 2 }
  0x14   : > { %s183_s25 = scalar_lea.vmem %s519_s1, %s351_s22  ;;  %v194_v5 = vpack.c.bf16 %v193_v2, %v193_v2  ;;  %s191_s29 = scalar_lea.vmem %s520_s2, %s353_s26 }
  0x15   : > { %v195_v1 = vld [vmem:[%s183_s25] sm:$0xff] }
  0x16   : > { %v196_v3 = vpack.c.bf16 %v195_v1, %v195_v1 }
  0x18   : > { %v203_v4 = vsel %vm201_vm1, %v196_v3, 0 }
  0x19   : > { %360 = vmatpush3.bf16.msra.mxu0 %v203_v4 }
  0x1c   : > { %362 = vmatmul.mubr.msk.bf16.vlgmr.msra.gmra.mrb[0].mxu0 %vm197_vm2, %v194_v5 }
  0xef   : > { %v239_v6 = vpop.f32.mrb[0].mxu0 }
  0xf0   : > { %245 = vst [vmem:[%s191_s29] sm:$0xf] %v239_v6  ;;  %v363_v7 = vpop.f32.mrb[1].mxu0 }
  0xf1   : > { %v242_v8 = vpop.f32.mrb[2].mxu0 }
  0xf2   : > { %v364_v9 = vpop.f32.mrb[3].mxu0 }
  0xf3 PF: > { %s12_s13 = sadd.s32 1, %s445_s13   ;;  %s521_s9 = smov %s437_s11 }
  0xf4   : > { %p9_p7 = scmp.ge.s32.totalorder %s12_s13, 6   ;;  %s522_s10 = smov %s441_s12 }
  0xf5   : > { %s523_s11 = smov %s526_s14  ;;  %s524_s12 = smov %s530_s15 }
  0xf6   :  { %11 = sbr.rel (!%p9_p7) target bundleno = 3 (0x3), region = 61 }

// kernel: _lambda_.33
= control target key start
LH: loop header
LB: loop body
LE: loop exit
PB: predicated region body
PF: predicated region fallthrough
CT: control target
= control target key end

     0   :  { %s527_s1 = inlined_call_operand.vmem [shape: f32[512,128], index: 1, kind: input, shape index: {}]   ;;  %s528_s0 = inlined_call_operand.vmem [shape: f32[16,512], index: 0, kind: input, shape index: {}]   ;;  %s529_s2 = inlined_call_operand.vmem [shape: f32[1,128], index: 2, kind: input, shape index: {}]   ;;  %s530_s3 = inlined_call_operand.vmem [shape: f32[16,128], index: 3, kind: output, shape index: {}]  }
   0x1   :  { %v51_v0 = vld [vmem:[%s527_s1 + $0x80] sm:$0xff]  ;;  %v52_v1 = vld [vmem:[%s527_s1 + $0x88] sm:$0xff]  ;;  %v53_v11 = vld [vmem:[%s527_s1 + $0x90] sm:$0xff] }
   0x2   :  { %v83_v2 = vld [vmem:[%s527_s1 + $0x180] sm:$0xff]  ;;  %v107_v3 = vpack.c.bf16 %v52_v1, %v51_v0  ;;  %v84_v4 = vld [vmem:[%s527_s1 + $0x188] sm:$0xff]  ;;  %v54_v13 = vld [vmem:[%s527_s1 + $0x98] sm:$0xff] }
   0x3   :  { %v35_v5 = vld [vmem:[%s527_s1] sm:$0xff]  ;;  %v36_v6 = vld [vmem:[%s527_s1 + $0x8] sm:$0xff]  ;;  %v123_v7 = vpack.c.bf16 %v84_v4, %v83_v2  ;;  %v85_v14 = vld [vmem:[%s527_s1 + $0x190] sm:$0xff]  ;;  %v108_v16 = vpack.c.bf16 %v54_v13, %v53_v11 }
   0x4   :  { %v99_v8 = vpack.c.bf16 %v36_v6, %v35_v5  ;;  %v67_v9 = vld [vmem:[%s527_s1 + $0x100] sm:$0xff]  ;;  %v68_v10 = vld [vmem:[%s527_s1 + $0x108] sm:$0xff]  ;;  %238 = vmatprep.subr.bf16.mxu0 %v107_v3  ;;  %v86_v15 = vld [vmem:[%s527_s1 + $0x198] sm:$0xff] }
   0x5   :  { %v115_v12 = vpack.c.bf16 %v68_v10, %v67_v9  ;;  %260 = vmatprep.subr.bf16.mxu1 %v123_v7  ;;  %v124_v17 = vpack.c.bf16 %v86_v15, %v85_v14  ;;  %v37_v18 = vld [vmem:[%s527_s1 + $0x10] sm:$0xff]  ;;  %v38_v19 = vld [vmem:[%s527_s1 + $0x18] sm:$0xff]  ;;  %v55_v23 = vld [vmem:[%s527_s1 + $0xa0] sm:$0xff] }
   0x6   :  { %239 = vmatpush3.bf16.msra.mxu0 %v99_v8  ;;  %v69_v20 = vld [vmem:[%s527_s1 + $0x110] sm:$0xff]  ;;  %v100_v21 = vpack.c.bf16 %v38_v19, %v37_v18  ;;  %v70_v22 = vld [vmem:[%s527_s1 + $0x118] sm:$0xff]  ;;  %v56_v24 = vld [vmem:[%s527_s1 + $0xa8] sm:$0xff] }
   0x7   :  { %261 = vmatpush3.bf16.msra.mxu1 %v115_v12  ;;  %240 = vmatprep.subr.bf16.mxu0 %v108_v16  ;;  %v116_v25 = vpack.c.bf16 %v70_v22, %v69_v20  ;;  %v109_v26 = vpack.c.bf16 %v56_v24, %v55_v23  ;;  %v87_v27 = vld [vmem:[%s527_s1 + $0x1a0] sm:$0xff]  ;;  %v88_v28 = vld [vmem:[%s527_s1 + $0x1a8] sm:$0xff]  ;;  %v57_v35 = vld [vmem:[%s527_s1 + $0xb0] sm:$0xff] }
   0x8   :  { %262 = vmatprep.subr.bf16.mxu1 %v124_v17  ;;  %v39_v29 = vld [vmem:[%s527_s1 + $0x20] sm:$0xff]  ;;  %v125_v30 = vpack.c.bf16 %v88_v28, %v87_v27  ;;  %v40_v31 = vld [vmem:[%s527_s1 + $0x28] sm:$0xff]  ;;  %v58_v36 = vld [vmem:[%s527_s1 + $0xb8] sm:$0xff] }
   0x9   :  { %v71_v32 = vld [vmem:[%s527_s1 + $0x120] sm:$0xff]  ;;  %v72_v33 = vld [vmem:[%s527_s1 + $0x128] sm:$0xff]  ;;  %v101_v34 = vpack.c.bf16 %v40_v31, %v39_v29  ;;  %v89_v37 = vld [vmem:[%s527_s1 + $0x1b0] sm:$0xff]  ;;  %v110_v39 = vpack.c.bf16 %v58_v36, %v57_v35 }
   0xa   :  { %241 = vmatpush3.bf16.msra.mxu0 %v100_v21  ;;  %v117_v38 = vpack.c.bf16 %v72_v33, %v71_v32  ;;  %v90_v40 = vld [vmem:[%s527_s1 + $0x1b8] sm:$0xff]  ;;  %v41_v41 = vld [vmem:[%s527_s1 + $0x30] sm:$0xff]  ;;  %v59_v46 = vld [vmem:[%s527_s1 + $0xc0] sm:$0xff] }
   0xb   :  { %263 = vmatpush3.bf16.msra.mxu1 %v116_v25  ;;  %242 = vmatprep.subr.bf16.mxu0 %v109_v26  ;;  %v42_v42 = vld [vmem:[%s527_s1 + $0x38] sm:$0xff]  ;;  %v126_v43 = vpack.c.bf16 %v90_v40, %v89_v37  ;;  %v73_v44 = vld [vmem:[%s527_s1 + $0x130] sm:$0xff]  ;;  %v60_v47 = vld [vmem:[%s527_s1 + $0xc8] sm:$0xff] }
   0xc   :  { %264 = vmatprep.subr.bf16.mxu1 %v125_v30  ;;  %v74_v45 = vld [vmem:[%s527_s1 + $0x138] sm:$0xff]  ;;  %v91_v48 = vld [vmem:[%s527_s1 + $0x1c0] sm:$0xff]  ;;  %v92_v49 = vld [vmem:[%s527_s1 + $0x1c8] sm:$0xff]  ;;  %v102_v50 = vpack.c.bf16 %v42_v42, %v41_v41  ;;  %v111_v52 = vpack.c.bf16 %v60_v47, %v59_v46 }
   0xd   :  { %v118_v51 = vpack.c.bf16 %v74_v45, %v73_v44  ;;  %v43_v53 = vld [vmem:[%s527_s1 + $0x40] sm:$0xff]  ;;  %v44_v54 = vld [vmem:[%s527_s1 + $0x48] sm:$0xff]  ;;  %v127_v56 = vpack.c.bf16 %v92_v49, %v91_v48  ;;  %v61_v58 = vld [vmem:[%s527_s1 + $0xd0] sm:$0xff] }
   0xe   :  { %243 = vmatpush3.bf16.msra.mxu0 %v101_v34  ;;  %v75_v55 = vld [vmem:[%s527_s1 + $0x140] sm:$0xff]  ;;  %v76_v57 = vld [vmem:[%s527_s1 + $0x148] sm:$0xff]  ;;  %v62_v59 = vld [vmem:[%s527_s1 + $0xd8] sm:$0xff]  ;;  %v103_v62 = vpack.c.bf16 %v44_v54, %v43_v53 }
   0xf   :  { %265 = vmatpush3.bf16.msra.mxu1 %v117_v38  ;;  %244 = vmatprep.subr.bf16.mxu0 %v110_v39  ;;  %v93_v60 = vld [vmem:[%s527_s1 + $0x1d0] sm:$0xff]  ;;  %v94_v61 = vld [vmem:[%s527_s1 + $0x1d8] sm:$0xff]  ;;  %v119_v63 = vpack.c.bf16 %v76_v57, %v75_v55  ;;  %v112_v0 = vpack.c.bf16 %v62_v59, %v61_v58  ;;  %v63_v6 = vld [vmem:[%s527_s1 + $0xe0] sm:$0xff] }
  0x10   :  { %266 = vmatprep.subr.bf16.mxu1 %v126_v43  ;;  %v45_v1 = vld [vmem:[%s527_s1 + $0x50] sm:$0xff]  ;;  %v46_v2 = vld [vmem:[%s527_s1 + $0x58] sm:$0xff]  ;;  %v128_v4 = vpack.c.bf16 %v94_v61, %v93_v60  ;;  %v64_v7 = vld [vmem:[%s527_s1 + $0xe8] sm:$0xff] }
  0x11   :  { %v77_v3 = vld [vmem:[%s527_s1 + $0x150] sm:$0xff]  ;;  %v78_v5 = vld [vmem:[%s527_s1 + $0x158] sm:$0xff]  ;;  %v95_v8 = vld [vmem:[%s527_s1 + $0x1e0] sm:$0xff]  ;;  %v104_v11 = vpack.c.bf16 %v46_v2, %v45_v1  ;;  %v113_v16 = vpack.c.bf16 %v64_v7, %v63_v6 }
  0x12   :  { %245 = vmatpush3.bf16.msra.mxu0 %v102_v50  ;;  %v96_v9 = vld [vmem:[%s527_s1 + $0x1e8] sm:$0xff]  ;;  %v47_v10 = vld [vmem:[%s527_s1 + $0x60] sm:$0xff]  ;;  %v120_v15 = vpack.c.bf16 %v78_v5, %v77_v3  ;;  %v65_v17 = vld [vmem:[%s527_s1 + $0xf0] sm:$0xff] }
  0x13   :  { %267 = vmatpush3.bf16.msra.mxu1 %v118_v51  ;;  %246 = vmatprep.subr.bf16.mxu0 %v111_v52  ;;  %v48_v12 = vld [vmem:[%s527_s1 + $0x68] sm:$0xff]  ;;  %v79_v13 = vld [vmem:[%s527_s1 + $0x160] sm:$0xff]  ;;  %v129_v20 = vpack.c.bf16 %v96_v9, %v95_v8  ;;  %v66_v21 = vld [vmem:[%s527_s1 + $0xf8] sm:$0xff] }
  0x14   :  { %268 = vmatprep.subr.bf16.mxu1 %v127_v56  ;;  %v80_v14 = vld [vmem:[%s527_s1 + $0x168] sm:$0xff]  ;;  %v26_v23 = vld [vmem:[%s528_s0 + $0x18] sm:$0xff]  ;;  %v97_v25 = vld [vmem:[%s527_s1 + $0x1f0] sm:$0xff]  ;;  %v105_v28 = vpack.c.bf16 %v48_v12, %v47_v10  ;;  %v114_v30 = vpack.c.bf16 %v66_v21, %v65_v17 }
  0x15   :  { %v24_v18 = vld [vmem:[%s528_s0 + $0x8] sm:$0xff]  ;;  %v30_v24 = vld [vmem:[%s528_s0 + $0x38] sm:$0xff]  ;;  %v121_v29 = vpack.c.bf16 %v80_v14, %v79_v13  ;;  %v49_v31 = vld [vmem:[%s527_s1 + $0x70] sm:$0xff] }
  0x16   :  { %247 = vmatpush3.bf16.msra.mxu0 %v103_v62  ;;  %v28_v19 = vld [vmem:[%s528_s0 + $0x28] sm:$0xff]  ;;  %v98_v26 = vld [vmem:[%s527_s1 + $0x1f8] sm:$0xff]  ;;  %v34_v27 = vpack.c.bf16 %v30_v24, %v26_v23  ;;  %v81_v34 = vld [vmem:[%s527_s1 + $0x170] sm:$0xff] }
  0x17   :  { %269 = vmatpush3.bf16.msra.mxu1 %v119_v63  ;;  %248 = vmatprep.subr.bf16.mxu0 %v112_v0  ;;  %v32_v22 = vpack.c.bf16 %v28_v19, %v24_v18  ;;  %v50_v32 = vld [vmem:[%s527_s1 + $0x78] sm:$0xff]  ;;  %v130_v33 = vpack.c.bf16 %v98_v26, %v97_v25  ;;  %v23_v37 = vld [vmem:[%s528_s0] sm:$0xff]  ;;  %v25_v40 = vld [vmem:[%s528_s0 + $0x10] sm:$0xff] }
  0x18   :  { %270 = vmatprep.subr.bf16.mxu1 %v128_v4  ;;  %v82_v35 = vld [vmem:[%s527_s1 + $0x178] sm:$0xff]  ;;  %204 = vmatprep.mubr.bf16.mxu1 %v34_v27  ;;  %v106_v36 = vpack.c.bf16 %v50_v32, %v49_v31  ;;  %v27_v38 = vld [vmem:[%s528_s0 + $0x20] sm:$0xff]  ;;  %v29_v41 = vld [vmem:[%s528_s0 + $0x30] sm:$0xff] }
  0x19   :  { %163 = vmatprep.mubr.bf16.mxu0 %v32_v22  ;;  %v122_v39 = vpack.c.bf16 %v82_v35, %v81_v34  ;;  %v31_v42 = vpack.c.bf16 %v27_v38, %v23_v37  ;;  %v33_v43 = vpack.c.bf16 %v29_v41, %v25_v40  ;;  %v237_v53 = vld [vmem:[%s529_s2] ss:$0 sm:$0xff] }
  0x1a   :  { %249 = vmatpush3.bf16.msra.mxu0 %v104_v11 }
  0x1b   :  { %271 = vmatpush3.bf16.msra.mxu1 %v120_v15  ;;  %250 = vmatprep.subr.bf16.mxu0 %v113_v16 }
  0x1c   :  { %272 = vmatprep.subr.bf16.mxu1 %v129_v20 }
  0x1e   :  { %251 = vmatpush3.bf16.msra.mxu0 %v105_v28 }
  0x1f   :  { %273 = vmatpush3.bf16.msra.mxu1 %v121_v29  ;;  %252 = vmatprep.subr.bf16.mxu0 %v114_v30 }
  0x20   :  { %274 = vmatprep.subr.bf16.mxu1 %v130_v33 }
  0x22   :  { %253 = vmatpush3.bf16.msra.mxu0 %v106_v36 }
  0x23   :  { %275 = vmatpush3.bf16.msra.mxu1 %v122_v39 }
  0x25   :  { %164 = vmatmul.mubr.bf16.vlgmr.msra.gmra.mrb[0].mxu0 %v31_v42 }
  0x26   :  { %205 = vmatmul.mubr.bf16.vlgmr.msra.gmra.mrb[0].mxu1 %v33_v43 }
  0xf8   :  { %v254_v44 = vpop.f32.mrb[0].mxu0 }
  0xf9   :  { %v276_v45 = vpop.f32.mrb[0].mxu1  ;;  %v255_v46 = vpop.f32.mrb[1].mxu0 }
  0xfa   :  { %v256_v47 = vadd.f32 %v255_v46, %v254_v44  ;;  %v277_v48 = vpop.f32.mrb[1].mxu1  ;;  %v257_v49 = vpop.f32.mrb[2].mxu0 }
  0xfb   :  { %v278_v50 = vadd.f32 %v277_v48, %v276_v45  ;;  %v279_v51 = vpop.f32.mrb[2].mxu1  ;;  %v258_v52 = vpop.f32.mrb[3].mxu0 }
  0xfc   :  { %v259_v54 = vadd.f32 %v258_v52, %v257_v49  ;;  %v280_v55 = vpop.f32.mrb[3].mxu1 }
  0xfd   :  { %v207_v56 = vadd.f32 %v278_v50, %v256_v47  ;;  %v281_v57 = vadd.f32 %v280_v55, %v279_v51 }
  0xff   :  { %v229_v58 = vadd.f32 %v237_v53, %v207_v56  ;;  %v210_v59 = vadd.f32 %v281_v57, %v259_v54 }
 0x101   :  { %231 = vst [vmem:[%s530_s3] sm:$0xff] %v229_v58  ;;  %v230_v60 = vadd.f32 %v237_v53, %v210_v59 }
 0x103   :  { %232 = vst [vmem:[%s530_s3 + $0x8] sm:$0xff] %v230_v60 }

</bundles_post_ra>
